<compile_context>
chip_gen: v5e
topology: v5e:2x2
jax: 0.10.0
libtpu: 0.0.40
codegen_flags: <defaults>
</compile_context>

<pallas_src>
import math
import functools
from typing import NamedTuple

import jax
import jax.numpy as jnp
from jax.experimental import pallas as pl
from jax.experimental.pallas import tpu as pltpu


def _cdiv(a, b):
    return -(-a // b)


def _round_up(a, b):
    return _cdiv(a, b) * b


def _choose_tile(n, t_max, mult, min_blocks=1):
    """Tile <= t_max (multiple of `mult`) minimizing padding of n; returns (tile, nblocks)."""
    t_max = max(mult, (int(t_max) // mult) * mult)
    nb = max(min_blocks, _cdiv(n, t_max))
    t = _round_up(_cdiv(n, nb), mult)
    nb = max(min_blocks, _cdiv(n, t))
    return t, nb


def _vmem_capacity_bytes():
    try:
        cap = int(pltpu.get_tpu_info().vmem_capacity_bytes)
        if cap > 0:
            return cap
    except Exception:
        pass
    return 64 << 20   # conservative fallback (v7x per-core VMEM)


class PreparedAdj(NamedTuple):
    """Adjacency padded/cast ONCE (hoisted out of the per-layer call)."""
    data: jax.Array   # (n_rows_p, n_cols_p), zero-padded, compute dtype
    n: int            # original (square) size
    tm: int           # row tile
    tk: int           # contraction (col) tile


def prepare_adj(adj, *, tm=512, tk=2048, compute_dtype=jnp.bfloat16):
    """Pad + cast the (layer-invariant) adjacency once; reuse across GCNII layers."""
    n = adj.shape[0]
    assert adj.shape == (n, n), "adjacency must be square"
    tm_, gi = _choose_tile(n, tm, 8, min_blocks=2 if n > 8 else 1)   # >=2 i-blocks (Megacore)
    tk_, gk = _choose_tile(n, tk, 128, min_blocks=1)
    n_rows_p, n_cols_p = tm_ * gi, tk_ * gk
    adj_p = jnp.pad(adj, ((0, n_rows_p - n), (0, n_cols_p - n)))
    return PreparedAdj(adj_p.astype(jnp.dtype(compute_dtype)), n, tm_, tk_)


def _gcnii_kernel(*refs, alpha, variant, residual, x_resident, tk):
    # refs = (adj, x, h0, w1, [w2], [res], out, acc)
    n_in = 4 + (1 if variant else 0) + (1 if residual else 0)
    in_refs = refs[:n_in]
    out_ref, acc_ref = refs[n_in], refs[n_in + 1]
    adj_ref, x_ref, h0_ref, w1_ref = in_refs[:4]
    pos = 4
    w2_ref = None
    if variant:
        w2_ref = in_refs[pos]
        pos += 1
    res_ref = in_refs[pos] if residual else None

    k = pl.program_id(1)

    @pl.when(k == 0)
    def _():
        acc_ref[...] = jnp.zeros_like(acc_ref)

    if x_resident:
        # whole padded x lives in VMEM; slice the K-tile dynamically (no re-streaming).
        off = pl.multiple_of(k * tk, 128)
        x_tile = x_ref[pl.ds(off, tk), :]
    else:
        x_tile = x_ref[...]

    # hi += adj_tile @ x_tile   (MXU, f32 accumulation in VMEM scratch)
    acc_ref[...] += jnp.dot(adj_ref[...], x_tile,
                            preferred_element_type=jnp.float32)

    @pl.when(k == pl.num_programs(1) - 1)
    def _():
        hi = acc_ref[...]                                   # (tm, f_p) f32
        if variant:
            # theta, alpha and (1-theta)*r are folded into w1/w2 in the wrapper.
            out = (jnp.dot(hi, w1_ref[...], preferred_element_type=jnp.float32)
                   + jnp.dot(h0_ref[...].astype(jnp.float32), w2_ref[...],
                             preferred_element_type=jnp.float32))
        else:
            support = (1.0 - alpha) * hi + alpha * h0_ref[...].astype(jnp.float32)
            # w1 = theta*W + (1-theta)*I, so a single matmul is the whole epilogue.
            out = jnp.dot(support, w1_ref[...], preferred_element_type=jnp.float32)
        if residual:
            out = out + res_ref[...].astype(jnp.float32)
        out_ref[...] = out.astype(out_ref.dtype)


def graph_convolution(x, adj, h0, weight, *, lamda, alpha, l,
                      variant=False, residual=False,
                      tm=512, tk=2048, compute_dtype=None):
    """Pallas implementation of GCNII GraphConvolution.forward.

    `adj` may be a raw (N, N) array or a PreparedAdj (prepare once, reuse across
    layers).  adj/x/h0 are streamed in `compute_dtype` (default bf16, f32 MXU
    accumulation); folded weights and the epilogue stay f32.
    """
    if isinstance(adj, PreparedAdj):
        prep = adj
    else:
        prep = prepare_adj(
            adj, tm=tm, tk=tk,
            compute_dtype=(compute_dtype if compute_dtype is not None
                           else jnp.bfloat16))
    cdt = (jnp.dtype(compute_dtype) if compute_dtype is not None
           else jnp.dtype(prep.data.dtype))

    N = prep.n
    tm, tk = prep.tm, prep.tk
    n_rows_p, n_cols_p = prep.data.shape
    grid_i, grid_k = n_rows_p // tm, n_cols_p // tk

    f_in = x.shape[1]
    f_out = weight.shape[-1]
    assert x.shape[0] == N and h0.shape == (N, f_in)
    # The reference epilogue (theta*mm + (1-theta)*r, residual add) requires
    # in_features == out_features — same implicit constraint as the PyTorch code.
    assert f_in == f_out, "GCNII GraphConvolution requires in_features == out_features"
    assert weight.shape[0] == (2 * f_in if variant else f_in)

    out_dtype = x.dtype
    f_p = _round_up(f_out, 128)     # lane-dense vregs / unmasked stores

    # ---- fold theta (and the (1-theta)*r blend for variant) into the weights ----
    theta = math.log(lamda / l + 1.0)
    eye = jnp.eye(f_in, f_out, dtype=jnp.float32)
    w32 = weight.astype(jnp.float32)
    if variant:
        w1 = theta * w32[:f_in] + (1.0 - theta) * (1.0 - alpha) * eye
        w2 = theta * w32[f_in:] + (1.0 - theta) * alpha * eye
    else:
        w1 = theta * w32 + (1.0 - theta) * eye
        w2 = None

    def pad2(a, r, c):
        return jnp.pad(a, ((0, r - a.shape[0]), (0, c - a.shape[1])))

    x_p = pad2(x, n_cols_p, f_p).astype(cdt)
    h0_p = pad2(h0, n_rows_p, f_p).astype(cdt)
    w1_p = pad2(w1, f_p, f_p)                                # stays f32
    w2_p = pad2(w2, f_p, f_p) if variant else None
    res_p = pad2(x, n_rows_p, f_p).astype(cdt) if residual else None

    # ---- generation-aware VMEM budget -------------------------------------------
    cap = _vmem_capacity_bytes()
    budget = int(0.80 * cap)                  # headroom for compiler-internal scratch
    a_isz = jnp.dtype(prep.data.dtype).itemsize
    isz = cdt.itemsize
    o_isz = jnp.dtype(out_dtype).itemsize
    n_w = 2 if variant else 1

    def estimate(x_res):
        b = 2 * tm * tk * a_isz                                       # adj (dbl-buf)
        b += (2 * n_cols_p * f_p * isz) if x_res else (2 * tk * f_p * isz)
        b += 2 * tm * f_p * isz                                       # h0
        b += 2 * f_p * f_p * 4 * n_w                                  # folded weights
        if residual:
            b += 2 * tm * f_p * isz
        b += 2 * tm * f_p * o_isz                                     # output
        b += tm * f_p * 4                                             # f32 accumulator
        return b

    # Keep the whole padded x resident in VMEM (kills the per-i-pass re-streaming)
    # whenever it leaves comfortable headroom; otherwise fall back to K-tiled x.
    x_resident = estimate(True) <= (budget * 3) // 5
    est = estimate(x_resident)
    vmem_limit = int(min(max(int(est * 1.5), 16 << 20), budget))

    if x_resident:
        x_spec = pl.BlockSpec((n_cols_p, f_p), lambda i, k: (0, 0))   # resident
    else:
        x_spec = pl.BlockSpec((tk, f_p), lambda i, k: (k, 0))         # K-tiled

    in_specs = [
        pl.BlockSpec((tm, tk), lambda i, k: (i, k)),      # adj: streamed (i,k) tiles
        x_spec,
        pl.BlockSpec((tm, f_p), lambda i, k: (i, 0)),     # h0: row tile (1 DMA per i)
        pl.BlockSpec((f_p, f_p), lambda i, k: (0, 0)),    # folded weight (resident)
    ]
    args = [prep.data, x_p, h0_p, w1_p]
    if variant:
        args.append(w2_p)
        in_specs.append(pl.BlockSpec((f_p, f_p), lambda i, k: (0, 0)))
    if residual:
        # Only DMA the residual operand when it is actually used.
        args.append(res_p)
        in_specs.append(pl.BlockSpec((tm, f_p), lambda i, k: (i, 0)))

    kernel = functools.partial(
        _gcnii_kernel, alpha=float(alpha), variant=bool(variant),
        residual=bool(residual), x_resident=bool(x_resident), tk=int(tk))

    out_p = pl.pallas_call(
        kernel,
        out_shape=jax.ShapeDtypeStruct((n_rows_p, f_p), out_dtype),
        grid_spec=pltpu.PrefetchScalarGridSpec(
            num_scalar_prefetch=0,
            grid=(grid_i, grid_k),
            in_specs=in_specs,
            out_specs=pl.BlockSpec((tm, f_p), lambda i, k: (i, 0)),
            scratch_shapes=[pltpu.VMEM((tm, f_p), jnp.float32)]),
        compiler_params=pltpu.CompilerParams(
            dimension_semantics=("parallel", "arbitrary"),
            vmem_limit_bytes=vmem_limit),
    )(*args)

    return out_p[:N, :f_out]


def graph_convolution_ref(x, adj, h0, weight, *, lamda, alpha, l,
                          variant=False, residual=False):
    """Pure-JAX reference mirroring the PyTorch forward."""
    theta = math.log(lamda / l + 1.0)
    hi = adj @ x
    if variant:
        support = jnp.concatenate([hi, h0], axis=1)
        r = (1.0 - alpha) * hi + alpha * h0
    else:
        support = (1.0 - alpha) * hi + alpha * h0
        r = support
    out = theta * (support @ weight) + (1.0 - theta) * r
    if residual:
        out = out + x
    return out


if __name__ == "__main__":
    # Small deterministic example: N=512 nodes, F=128 features (in == out).
    N, F = 512, 128
    lamda, alpha, l = 0.5, 0.1, 2

    key = jax.random.PRNGKey(0)
    kx, kadj, kh0, kw = jax.random.split(key, 4)

    x = jax.random.normal(kx, (N, F), dtype=jnp.float32)
    a = jax.random.uniform(kadj, (N, N), dtype=jnp.float32)
    adj = a / jnp.sum(a, axis=1, keepdims=True)      # row-normalized dense adjacency
    h0 = jax.random.normal(kh0, (N, F), dtype=jnp.float32)

    stdv = 1.0 / math.sqrt(F)                        # reset_parameters()

    # Hoisted adjacency preparation: done ONCE, reused for every layer/call.
    adj_prep_f32 = prepare_adj(adj, compute_dtype=jnp.float32)
    adj_prep_bf16 = prepare_adj(adj, compute_dtype=jnp.bfloat16)

    # ---- exact f32 path: all (variant, residual) combinations -------------------
    for variant in (False, True):
        for residual in (False, True):
            in_w = 2 * F if variant else F
            w = jax.random.uniform(kw, (in_w, F), dtype=jnp.float32,
                                   minval=-stdv, maxval=stdv)
            out = graph_convolution(x, adj_prep_f32, h0, w, lamda=lamda,
                                    alpha=alpha, l=l, variant=variant,
                                    residual=residual)
            out = jax.block_until_ready(out)
            ref = graph_convolution_ref(x, adj, h0, w, lamda=lamda, alpha=alpha,
                                        l=l, variant=variant, residual=residual)
            assert jnp.allclose(out, ref, atol=2e-4, rtol=2e-4), \
                f"f32 mismatch (variant={variant}, residual={residual})"

    # ---- default bf16-streaming path (f32 accumulation) -------------------------
    x_bf = x.astype(jnp.bfloat16).astype(jnp.float32)
    adj_bf = adj.astype(jnp.bfloat16).astype(jnp.float32)
    h0_bf = h0.astype(jnp.bfloat16).astype(jnp.float32)
    for variant, residual in ((False, False), (True, True)):
        in_w = 2 * F if variant else F
        w = jax.random.uniform(kw, (in_w, F), dtype=jnp.float32,
                               minval=-stdv, maxval=stdv)
        out = graph_convolution(x, adj_prep_bf16, h0, w, lamda=lamda, alpha=alpha,
                                l=l, variant=variant, residual=residual)
        out = jax.block_until_ready(out)
        ref = graph_convolution_ref(x_bf, adj_bf, h0_bf, w, lamda=lamda,
                                    alpha=alpha, l=l, variant=variant,
                                    residual=residual)
        assert jnp.allclose(out, ref, atol=5e-2, rtol=5e-2), \
            f"bf16 mismatch (variant={variant}, residual={residual})"

    # ---- raw-adj convenience path (prepares + casts internally, bf16 default) ---
    w = jax.random.uniform(kw, (F, F), dtype=jnp.float32, minval=-stdv, maxval=stdv)
    out = graph_convolution(x, adj, h0, w, lamda=lamda, alpha=alpha, l=l)
    out = jax.block_until_ready(out)
    ref = graph_convolution_ref(x_bf, adj_bf, h0_bf, w, lamda=lamda, alpha=alpha, l=l)
    assert jnp.allclose(out, ref, atol=5e-2, rtol=5e-2), "raw-adj path mismatch"

    print("KERNEL_OK")
</pallas_src>

<mosaic_0001>
module attributes {stable_mosaic.version = 11 : i64} {
  func.func @_gcnii_kernel(%arg0: i32, %arg1: i32, %arg2: memref<256x512xf32, #tpu.memory_space<vmem>>, %arg3: memref<512x128xf32, #tpu.memory_space<vmem>>, %arg4: memref<256x128xf32, #tpu.memory_space<vmem>>, %arg5: memref<128x128xf32, #tpu.memory_space<vmem>>, %arg6: memref<256x128xf32, #tpu.memory_space<vmem>>, %arg7: memref<256x128xf32, #tpu.memory_space<vmem>>) attributes {dimension_semantics = [#tpu.dimension_semantics<parallel>, #tpu.dimension_semantics<arbitrary>], iteration_bounds = array<i64: 2, 1>, scalar_prefetch = 0 : i64, scratch_operands = 1 : i64, tpu.core_type = #tpu.core_type<tc>, window_params = [{transform_indices = @transform_0, window_bounds = array<i64: 256, 512>}, {pipeline_mode = #tpu.pipeline_mode<synchronous>, transform_indices = @transform_1, window_bounds = array<i64: 512, 128>}, {transform_indices = @transform_2, window_bounds = array<i64: 256, 128>}, {pipeline_mode = #tpu.pipeline_mode<synchronous>, transform_indices = @transform_3, window_bounds = array<i64: 128, 128>}, {transform_indices = @transform_4, window_bounds = array<i64: 256, 128>}]} {
    %c0_i32 = arith.constant 0 : i32
    %0 = arith.cmpi eq, %arg1, %c0_i32 : i32
    %1 = arith.extui %0 : i1 to i32
    %c0_i32_0 = arith.constant 0 : i32
    %2 = arith.cmpi ne, %1, %c0_i32_0 : i32
    scf.if %2 {
      %cst_9 = arith.constant 0.000000e+00 : f32
      %15 = vector.broadcast %cst_9 : f32 to vector<256x128xf32>
      %c0_10 = arith.constant 0 : index
      %c0_11 = arith.constant 0 : index
      %16 = vector.load %arg7[%c0_10, %c0_11] : memref<256x128xf32, #tpu.memory_space<vmem>>, vector<256x128xf32>
      tpu.vector_store %arg7[%c0_10, %c0_11], %15 {strides = array<i32>} : memref<256x128xf32, #tpu.memory_space<vmem>>, vector<256x128xf32>,
    } else {
    }
    %c512_i32 = arith.constant 512 : i32
    %3 = arith.muli %arg1, %c512_i32 : i32
    %4 = tpu.assume_multiple %3, 128 : i32
    %5 = arith.index_cast %4 : i32 to index
    %c0 = arith.constant 0 : index
    %6 = vector.load %arg3[%5, %c0] : memref<512x128xf32, #tpu.memory_space<vmem>>, vector<512x128xf32>
    %c0_1 = arith.constant 0 : index
    %c0_2 = arith.constant 0 : index
    %7 = vector.load %arg7[%c0_1, %c0_2] : memref<256x128xf32, #tpu.memory_space<vmem>>, vector<256x128xf32>
    %c0_3 = arith.constant 0 : index
    %c0_4 = arith.constant 0 : index
    %8 = vector.load %arg2[%c0_3, %c0_4] : memref<256x512xf32, #tpu.memory_space<vmem>>, vector<256x512xf32>
    %cst = arith.constant dense<0.000000e+00> : vector<256x128xf32>
    %9 = tpu.matmul %8, %6, %cst {dimension_numbers = #tpu.dot_dimension_numbers<[1], [0], [0], [1], [0, 0, 1, 1], [], []>} : vector<256x512xf32>, vector<512x128xf32>, vector<256x128xf32> -> vector<256x128xf32>
    %10 = arith.addf %7, %9 : vector<256x128xf32>
    %c0_5 = arith.constant 0 : index
    %c0_6 = arith.constant 0 : index
    %11 = vector.load %arg7[%c0_5, %c0_6] : memref<256x128xf32, #tpu.memory_space<vmem>>, vector<256x128xf32>
    tpu.vector_store %arg7[%c0_5, %c0_6], %10 {strides = array<i32>} : memref<256x128xf32, #tpu.memory_space<vmem>>, vector<256x128xf32>,
    %c0_i32_7 = arith.constant 0 : i32
    %12 = arith.cmpi eq, %arg1, %c0_i32_7 : i32
    %13 = arith.extui %12 : i1 to i32
    %c0_i32_8 = arith.constant 0 : i32
    %14 = arith.cmpi ne, %13, %c0_i32_8 : i32
    scf.if %14 {
      %c0_9 = arith.constant 0 : index
      %c0_10 = arith.constant 0 : index
      %15 = vector.load %arg7[%c0_9, %c0_10] : memref<256x128xf32, #tpu.memory_space<vmem>>, vector<256x128xf32>
      %cst_11 = arith.constant 0.899999976 : f32
      %16 = vector.broadcast %cst_11 : f32 to vector<256x128xf32>
      %17 = arith.mulf %16, %15 : vector<256x128xf32>
      %c0_12 = arith.constant 0 : index
      %c0_13 = arith.constant 0 : index
      %18 = vector.load %arg4[%c0_12, %c0_13] : memref<256x128xf32, #tpu.memory_space<vmem>>, vector<256x128xf32>
      %cst_14 = arith.constant 1.000000e-01 : f32
      %19 = vector.broadcast %cst_14 : f32 to vector<256x128xf32>
      %20 = arith.mulf %19, %18 : vector<256x128xf32>
      %21 = arith.addf %17, %20 : vector<256x128xf32>
      %c0_15 = arith.constant 0 : index
      %c0_16 = arith.constant 0 : index
      %22 = vector.load %arg5[%c0_15, %c0_16] : memref<128x128xf32, #tpu.memory_space<vmem>>, vector<128x128xf32>
      %cst_17 = arith.constant dense<0.000000e+00> : vector<256x128xf32>
      %23 = tpu.matmul %21, %22, %cst_17 {dimension_numbers = #tpu.dot_dimension_numbers<[1], [0], [0], [1], [0, 0, 1, 1], [], []>} : vector<256x128xf32>, vector<128x128xf32>, vector<256x128xf32> -> vector<256x128xf32>
      %c0_18 = arith.constant 0 : index
      %c0_19 = arith.constant 0 : index
      %24 = vector.load %arg6[%c0_18, %c0_19] : memref<256x128xf32, #tpu.memory_space<vmem>>, vector<256x128xf32>
      tpu.vector_store %arg6[%c0_18, %c0_19], %23 {strides = array<i32>} : memref<256x128xf32, #tpu.memory_space<vmem>>, vector<256x128xf32>,
    } else {
    }
    return
  }
  func.func @transform_0(%arg0: i32, %arg1: i32) -> (i32, i32) {
    %c0_i32 = arith.constant 0 : i32
    return %arg0, %arg1 : i32, i32
  }
  func.func @transform_1(%arg0: i32, %arg1: i32) -> (i32, i32) {
    %c0_i32 = arith.constant 0 : i32
    %c0_i32_0 = arith.constant 0 : i32
    %c0_i32_1 = arith.constant 0 : i32
    return %c0_i32, %c0_i32_0 : i32, i32
  }
  func.func @transform_2(%arg0: i32, %arg1: i32) -> (i32, i32) {
    %c0_i32 = arith.constant 0 : i32
    %c0_i32_0 = arith.constant 0 : i32
    return %arg0, %c0_i32 : i32, i32
  }
  func.func @transform_3(%arg0: i32, %arg1: i32) -> (i32, i32) {
    %c0_i32 = arith.constant 0 : i32
    %c0_i32_0 = arith.constant 0 : i32
    %c0_i32_1 = arith.constant 0 : i32
    return %c0_i32, %c0_i32_0 : i32, i32
  }
  func.func @transform_4(%arg0: i32, %arg1: i32) -> (i32, i32) {
    %c0_i32 = arith.constant 0 : i32
    %c0_i32_0 = arith.constant 0 : i32
    return %arg0, %c0_i32 : i32, i32
  }
}

</mosaic_0001>

<bundles_post_ra>
// kernel: tpu_custom_call.1
= control target key start
LH: loop header
LB: loop body
LE: loop exit
PB: predicated region body
PF: predicated region fallthrough
CT: control target
= control target key end

     0   :  { %s2437_s0 = inlined_call_operand.hbm [shape: f32[512,512], index: 0, kind: input, shape index: {}]   ;;  %s2438_s1 = inlined_call_operand.hbm [shape: f32[512,128], index: 1, kind: input, shape index: {}]   ;;  %s2439_s2 = inlined_call_operand.hbm [shape: f32[512,128], index: 2, kind: input, shape index: {}]   ;;  %s2440_s3 = inlined_call_operand.hbm [shape: f32[128,128], index: 3, kind: input, shape index: {}]   ;;  %s2441_s4 = inlined_call_operand.hbm [shape: f32[512,128], index: 4, kind: output, shape index: {}]  }
   0x1   :  { %2452 = sst [smem:[#allocation22_spill]] %s2437_s0 }
   0x2   :  { %2453 = sst [smem:[#allocation23_spill]] %s2438_s1 }
   0x3   :  { %9 = vsyncpa [#allocation4], 0 }
   0x4   :  { %11 = vsyncpa [#allocation4 + $0x1], 0 }
   0x5   :  { %12 = vsyncpa [#allocation7], 0 }
   0x6   :  { %13 = vsyncpa [#allocation5], 0 }
   0x7   :  { %15 = vsyncpa [#allocation5 + $0x1], 0  ;;  %s1973_s15 = smov 0   ;;  %s1975_s16 = smov 0  }
   0x8   :  { %s1977_s17 = smov 0   ;;  %s1979_s18 = smov 0  }
   0x9   :  { %s1981_s19 = smov 0   ;;  %s1983_s20 = smov 0  }
   0xa LB: > { %2454 = sst [smem:[#allocation16_spill]] %s1918_s15  ;;  %s2004_s21 = sadd.s32 4294967295, %s1938_s20   ;;  %s1938_s20 = sphi %s1983_s20, %s21_s20   ;;  %s1934_s19 = sphi %s1981_s19, %s2480_s19   ;;  %s1930_s18 = sphi %s1979_s18, %s2479_s18   ;;  %s1926_s17 = sphi %s1977_s17, %s2475_s17   ;;  %s1922_s16 = sphi %s1975_s16, %s2478_s16   ;;  %s1918_s15 = sphi %s1973_s15, %s2477_s15  }
   0xb   : > { %2455 = sst [smem:[#allocation17_spill]] %s1926_s17  ;;  %s1555_s22 = sadd.s32 4294967294, %s1938_s20  }
   0xc   : > { %2456 = sst [smem:[#allocation18_spill]] %s1938_s20  ;;  %p55_p0 = scmp.ne.s32.totalorder %s1922_s16, %s1918_s15 }
   0xd   : > { %p56_p1 = scmp.eq.s32.totalorder %s2004_s21, 0  ;;  %p147_p2 = scmp.eq.s32.totalorder %s2004_s21, 1 }
   0xe   : > { %p153_p3 = scmp.eq.s32.totalorder %s1555_s22, 1  ;;  %p1556_p5 = scmp.ge.s32.totalorder %s1938_s20, 1 }
   0xf   : > { %p2013_p4 = por %p56_p1, %p55_p0  ;;  %p160_p7 = scmp.lt.s32.totalorder %s1938_s20, 3 }
  0x10   : > { %p2018_p6 = por %p153_p3, %p55_p0  ;;  %s2460_s1 = sld [smem:[#allocation23_spill]] }
  0x11   : > { %p2026_p8 = pnand %p1556_p5, %p160_p7  ;;  %s1940_s29 = smov [#allocation6]  }
  0x12   : > { %s2458_s24 = scalar_select %p2018_p6, 1, 0 }
  0x13   : > { %p1644_p9 = pneg %p2026_p8  ;;  %s173_s30 = sshll.u32 %s1940_s29, 4  ;;  %s174_s30 = int_to_ptr.vmem [resolvable:$true] %s173_s30 }
  0x14   : > { %2459 = sst [smem:[#allocation19_spill]] %s2458_s24  ;;  %p1559_p11 = scmp.ge.s32.totalorder %s1938_s20, 2 }
  0x15   : > { %p2034_p10 = pnand %p1644_p9, %p56_p1  ;;  %s2442_s6 = smov 128  }
  0x16   : > { %s171_s27 = sshll.u32 %s2460_s1, 4  ;;  %s2444_s7 = smov 8   ;;  %s172_s27 = int_to_ptr.hbm [resolvable:$true] %s171_s27 }
  0x17   : > { %1647 = dma.hbm_to_vmem [thread:$0]  (!%p2034_p10), %s172_s27, 8192, %s174_s30, [#allocation7], %s2442_s6, %s2442_s6, %s2444_s7  }
  0x18   : > { %s33_s8 = sadd.s32 1, %s1934_s19  ;;  %s42_s9 = sadd.s32 1, %s1926_s17 }
  0x19   : > { %p35_p12 = scmp.ge.s32.totalorder %s33_s8, 2  ;;  %p49_p13 = scmp.ne.s32.totalorder %s1926_s17, %s1922_s16 }
  0x1a   : > { %p50_p0 = scmp.eq.s32.totalorder %s1938_s20, 0  ;;  %p1664_p7 = scmp.lt.s32.totalorder %s1938_s20, 2 }
  0x1b   : > { %s2482_s8 = smov (%p35_p12, %s33_s8), 0  ;;  %p2057_p5 = por %p147_p2, %p49_p13 }
  0x1c   : > { %2463 = sst [smem:[#allocation20_spill]] %s2482_s8  ;;  %p2051_p3 = por %p50_p0, %p49_p13 }
  0x1d   : > { %s37_s12 = ssub.s32 %s1934_s19, %s2482_s8  ;;  %s201_s13 = sand.u32 1, %s1938_s20  }
  0x1e   : > { %p40_p9 = scmp.eq.s32.totalorder %s37_s12, 0  ;;  %s203_s14 = sand.u32 1, %s1926_s17  }
  0x1f   : > { %s1560_s25 = sshll.u32 %s203_s14, 10  ;;  %s1579_s26 = sshll.u32 %s1934_s19, 10 }
  0x20   : > { %s2067_s22 = scalar_select %p40_p9, %s1926_s17, %s42_s9  }
  0x21   : > { %s2467_s0 = sld [smem:[#allocation22_spill]]  ;;  %s205_s7 = scalar_lea.vmem [#allocation3], %s1560_s25 }
  0x22   : > { %2466 = sst [smem:[#allocation21_spill]] %s2067_s22  ;;  %s216_s1 = sshll.u32 %s205_s7, 4  ;;  %s217_s1 = int_to_ptr.vmem [resolvable:$true] %s216_s1 }
  0x23   : > { %p2077_p2 = pnand %p1664_p7, %p2051_p3  ;;  %s1564_s9 = sshll.u32 %s203_s14, 8 }
  0x24   : > { %s202_s8 = scalar_lea.sflag [#allocation4], %s201_s13  ;;  %s1943_s22 = smov 512  }
  0x25   : > { %s1944_s27 = smov 32   ;;  %s230_s25 = scalar_lea.vmem [#allocation8], %s1564_s9 }
  0x26   : > { %s185_s10 = sshll.u32 %s2440_s3, 4  ;;  %s1580_s17 = sshll.u32 %s1934_s19, 8  ;;  %s186_s10 = int_to_ptr.hbm [resolvable:$true] %s185_s10 }
  0x27   : > { %s213_s30 = scalar_lea.hbm %s2467_s0, %s1579_s26  ;;  %s238_s26 = sshll.u32 %s230_s25, 4  ;;  %s239_s26 = int_to_ptr.vmem [resolvable:$true] %s238_s26 }
  0x28   : > { %s214_s6 = sshll.u32 %s213_s30, 4  ;;  %s1945_s30 = smov [#allocation9]   ;;  %s215_s6 = int_to_ptr.hbm [resolvable:$true] %s214_s6 }
  0x29   : > { %1654 = dma.hbm_to_vmem [thread:$0]  (!%p2077_p2), %s215_s6, 16384, %s217_s1, %s202_s8, %s1943_s22, %s1943_s22, %s1944_s27  }
  0x2a   : > { %s187_s0 = sshll.u32 %s1945_s30, 4  ;;  %s235_s13 = scalar_lea.hbm %s2439_s2, %s1580_s17  ;;  %s188_s0 = int_to_ptr.vmem [resolvable:$true] %s187_s0 }
  0x2b   : > { %s2469_s14 = smov 8   ;;  %s2470_s15 = smov 128  }
  0x2c   : > { %1650 = dma.hbm_to_vmem [thread:$0]  (!%p2034_p10), %s186_s10, 2048, %s188_s0, [#allocation7], %s2470_s15, %s2470_s15, %s2469_s14  }
  0x2d   : > { %s236_s1 = sshll.u32 %s235_s13, 4  ;;  %250 = sbr.rel (%p2026_p8) target bundleno = 672 (0x2a0), region = 36  ;;  %s237_s1 = int_to_ptr.hbm [resolvable:$true] %s236_s1 }
  0x2e   : > { %1657 = dma.hbm_to_vmem [thread:$0]  (!%p2077_p2), %s237_s1, 4096, %s239_s26, %s202_s8, %s2470_s15, %s2470_s15, %s2469_s14  }
  0x2f   : > { %s252_s17 = sand.u32 (!%p2026_p8), 1, %s2004_s21   ;;  %s2104_s20 = sand.u32 (!%p2026_p8), 1, %s1922_s16  }
  0x30   : > { %s1568_s24 = sshll.u32 (!%p2026_p8), %s2104_s20, 10  ;;  %s253_s0 = scalar_lea.sflag (!%p2026_p8), [#allocation4], %s252_s17 }
  0x31   : > { %s2107_s5 = scalar_lea.vmem (!%p2026_p8), [#allocation3], %s1568_s24 }
  0x32   : > { %1897 = dma.done.wait (%p2013_p4), %s253_s0, 16384  }
  0x33   : > { %1899 = vsyncadd (%p2013_p4), %s253_s0, 4294950912 }
  0x34   : > { %1901 = dma.done.wait (%p56_p1), [#allocation7], 8192  }
  0x35   : > { %1903 = vsyncadd (%p56_p1), [#allocation7], 4294959104  ;;  %s1570_s15 = sshll.u32 %s2104_s20, 8 }
  0x36   : > { %s2120_s28 = scalar_lea.vmem [#allocation8], %s1570_s15 }
  0x37   : > { %1905 = dma.done.wait (%p2013_p4), %s253_s0, 4096  }
  0x38   : > { %1907 = vsyncadd (%p2013_p4), %s253_s0, 4294963200 }
  0x39   : > { %1909 = dma.done.wait (%p56_p1), [#allocation7], 2048  }
  0x3a   : > { %1911 = vsyncadd (%p56_p1), [#allocation7], 4294965248  ;;  %v364_v0 = vld [vmem:[#allocation6 + $0x78] sm:$0xff]  ;;  %v363_v1 = vld [vmem:[#allocation6 + $0x70] sm:$0xff]  ;;  %s2335_s21 = scalar_lea.vmem [#allocation10], %s1570_s15  ;;  %s1581_s23 = sshll.u32 %s1930_s18, 8 }
  0x3b   : > { %1582 = vmatpush.msra.mxu1 %v364_v0  ;;  %1583 = vmatpush.msra.mxu2 %v364_v0  ;;  %v362_v2 = vld [vmem:[#allocation6 + $0x68] sm:$0xff]  ;;  %v361_v3 = vld [vmem:[#allocation6 + $0x60] sm:$0xff]  ;;  %v360_v4 = vld [vmem:[#allocation6 + $0x58] sm:$0xff]  ;;  %s1425_s22 = scalar_lea.hbm %s2441_s4, %s1581_s23  ;;  %s1426_s12 = sshll.u32 %s2335_s21, 4  ;;  %s1427_s12 = int_to_ptr.vmem [resolvable:$true] %s1426_s12 }
  0x3c   : > { %1584 = vmatpush.msra.mxu3 %v364_v0  ;;  %573 = vmatpush.msra.mxu0 %v364_v0  ;;  %v359_v5 = vld [vmem:[#allocation6 + $0x50] sm:$0xff]  ;;  %v358_v6 = vld [vmem:[#allocation6 + $0x48] sm:$0xff]  ;;  %v357_v7 = vld [vmem:[#allocation6 + $0x40] sm:$0xff]  ;;  %s1428_s9 = sshll.u32 %s1425_s22, 4  ;;  %s1414_s27 = scalar_lea.sflag [#allocation5], %s2104_s20  ;;  %s1429_s9 = int_to_ptr.hbm [resolvable:$true] %s1428_s9 }
  0x3d   : > { %1585 = vmatpush.msra.mxu1 %v363_v1  ;;  %1586 = vmatpush.msra.mxu2 %v363_v1  ;;  %v356_v8 = vld [vmem:[#allocation6 + $0x38] sm:$0xff]  ;;  %v355_v9 = vld [vmem:[#allocation6 + $0x30] sm:$0xff]  ;;  %v354_v10 = vld [vmem:[#allocation6 + $0x28] sm:$0xff]  ;;  %s1858_s25 = sshra.s32 %s1429_s9, 4  ;;  %s1864_s29 = scalar_lea.hbm %s2441_s4, 512  ;;  %s1859_s25 = int_to_ptr.hbm [resolvable:$true] %s1858_s25 }
  0x3e   : > { %1587 = vmatpush.msra.mxu3 %v363_v1  ;;  %574 = vmatpush.msra.mxu0 %v363_v1  ;;  %v353_v11 = vld [vmem:[#allocation6 + $0x20] sm:$0xff]  ;;  %v352_v12 = vld [vmem:[#allocation6 + $0x18] sm:$0xff]  ;;  %v351_v13 = vld [vmem:[#allocation6 + $0x10] sm:$0xff]  ;;  %s1860_s26 = scalar_lea.hbm %s1859_s25, 256  ;;  %p1865_p10 = scmp.lt.s32.totalorder %s1859_s25, %s2441_s4 }
  0x3f   : > { %1588 = vmatpush.msra.mxu1 %v362_v2  ;;  %1589 = vmatpush.msra.mxu2 %v362_v2  ;;  %v350_v14 = vld [vmem:[#allocation6 + $0x8] sm:$0xff]  ;;  %v349_v15 = vld [vmem:[#allocation6] sm:$0xff]  ;;  %v396_v18 = vld [vmem:[#allocation6 + $0x178] sm:$0xff]  ;;  %p1861_p1 = scmp.ne.s32.totalorder %s1859_s25, %s1860_s26  ;;  %p1866_p12 = scmp.lt.s32.totalorder %s1864_s29, %s1860_s26 }
  0x40   : > { %1590 = vmatpush.msra.mxu3 %v362_v2  ;;  %575 = vmatpush.msra.mxu0 %v362_v2  ;;  %v477_v16 = vld [vmem:[%s2107_s5 + $0x100] sm:$0xff]  ;;  %v380_v20 = vld [vmem:[#allocation6 + $0xf8] sm:$0xff]  ;;  %v395_v22 = vld [vmem:[#allocation6 + $0x170] sm:$0xff] }
  0x41   : > { %1591 = vmatpush.msra.mxu1 %v361_v3  ;;  %1592 = vmatpush.msra.mxu2 %v361_v3  ;;  %v509_v17 = vld [vmem:[%s2107_s5 + $0x200] sm:$0xff]  ;;  %v412_v21 = vld [vmem:[#allocation6 + $0x1f8] sm:$0xff]  ;;  %v379_v23 = vld [vmem:[#allocation6 + $0xf0] sm:$0xff]  ;;  %p1862_p4 = pnand %p1861_p1, %p2057_p5  ;;  %p1867_p13 = por %p1866_p12, %p1865_p10 }
  0x42   : > { %1593 = vmatpush.msra.mxu3 %v361_v3  ;;  %576 = vmatpush.msra.mxu0 %v361_v3  ;;  %v541_v19 = vld [vmem:[%s2107_s5 + $0x300] sm:$0xff]  ;;  %v411_v24 = vld [vmem:[#allocation6 + $0x1f0] sm:$0xff]  ;;  %v394_v25 = vld [vmem:[#allocation6 + $0x168] sm:$0xff] }
  0x43   : > { %1594 = vmatpush.msra.mxu1 %v360_v4  ;;  %1595 = vmatpush.msra.mxu2 %v360_v4  ;;  %v378_v26 = vld [vmem:[#allocation6 + $0xe8] sm:$0xff]  ;;  %v393_v28 = vld [vmem:[#allocation6 + $0x160] sm:$0xff]  ;;  %v392_v34 = vld [vmem:[#allocation6 + $0x158] sm:$0xff]  ;;  %p1863_p8 = pneg %p1862_p4 }
  0x44   : > { %1596 = vmatpush.msra.mxu3 %v360_v4  ;;  %577 = vmatpush.msra.mxu0 %v360_v4  ;;  %v410_v27 = vld [vmem:[#allocation6 + $0x1e8] sm:$0xff]  ;;  %v481_v29 = vld [vmem:[%s2107_s5 + $0x120] sm:$0xff]  ;;  %v408_v35 = vld [vmem:[#allocation6 + $0x1d8] sm:$0xff] }
  0x45   : > { %1597 = vmatpush.msra.mxu1 %v359_v5  ;;  %1598 = vmatpush.msra.mxu2 %v359_v5  ;;  %v513_v30 = vld [vmem:[%s2107_s5 + $0x220] sm:$0xff]  ;;  %v376_v36 = vld [vmem:[#allocation6 + $0xd8] sm:$0xff]  ;;  %v391_v37 = vld [vmem:[#allocation6 + $0x150] sm:$0xff]  ;;  %p1868_p0 = pnand %p1867_p13, %p1863_p8 }
  0x46   : > { %1599 = vmatpush.msra.mxu3 %v359_v5  ;;  %578 = vmatpush.msra.mxu0 %v359_v5  ;;  %v409_v31 = vld [vmem:[#allocation6 + $0x1e0] sm:$0xff]  ;;  %v407_v38 = vld [vmem:[#allocation6 + $0x1d0] sm:$0xff]  ;;  %v390_v40 = vld [vmem:[#allocation6 + $0x148] sm:$0xff] }
  0x47   : > { %1600 = vmatpush.msra.mxu1 %v358_v6  ;;  %1601 = vmatpush.msra.mxu2 %v358_v6  ;;  %v377_v32 = vld [vmem:[#allocation6 + $0xe0] sm:$0xff]  ;;  %v375_v39 = vld [vmem:[#allocation6 + $0xd0] sm:$0xff]  ;;  %v406_v41 = vld [vmem:[#allocation6 + $0x1c8] sm:$0xff] }
  0x48   : > { %1602 = vmatpush.msra.mxu3 %v358_v6  ;;  %579 = vmatpush.msra.mxu0 %v358_v6  ;;  %v545_v33 = vld [vmem:[%s2107_s5 + $0x320] sm:$0xff]  ;;  %v374_v42 = vld [vmem:[#allocation6 + $0xc8] sm:$0xff]  ;;  %v388_v49 = vld [vmem:[#allocation6 + $0x138] sm:$0xff] }
  0x49   : > { %1603 = vmatpush.msra.mxu1 %v357_v7  ;;  %1604 = vmatpush.msra.mxu2 %v357_v7  ;;  %v485_v43 = vld [vmem:[%s2107_s5 + $0x140] sm:$0xff]  ;;  %v404_v50 = vld [vmem:[#allocation6 + $0x1b8] sm:$0xff]  ;;  %v387_v52 = vld [vmem:[#allocation6 + $0x130] sm:$0xff] }
  0x4a   : > { %1605 = vmatpush.msra.mxu3 %v357_v7  ;;  %580 = vmatpush.msra.mxu0 %v357_v7  ;;  %v517_v44 = vld [vmem:[%s2107_s5 + $0x240] sm:$0xff]  ;;  %v372_v51 = vld [vmem:[#allocation6 + $0xb8] sm:$0xff]  ;;  %v403_v53 = vld [vmem:[#allocation6 + $0x1b0] sm:$0xff] }
  0x4b   : > { %1606 = vmatpush.msra.mxu1 %v356_v8  ;;  %1607 = vmatpush.msra.mxu2 %v356_v8  ;;  %v389_v45 = vld [vmem:[#allocation6 + $0x140] sm:$0xff]  ;;  %v371_v54 = vld [vmem:[#allocation6 + $0xb0] sm:$0xff]  ;;  %v386_v55 = vld [vmem:[#allocation6 + $0x128] sm:$0xff] }
  0x4c   : > { %1608 = vmatpush.msra.mxu3 %v356_v8  ;;  %581 = vmatpush.msra.mxu0 %v356_v8  ;;  %v405_v46 = vld [vmem:[#allocation6 + $0x1c0] sm:$0xff]  ;;  %v402_v56 = vld [vmem:[#allocation6 + $0x1a8] sm:$0xff]  ;;  %v384_v0 = vld [vmem:[#allocation6 + $0x118] sm:$0xff] }
  0x4d   : > { %1609 = vmatpush.msra.mxu1 %v355_v9  ;;  %1610 = vmatpush.msra.mxu2 %v355_v9  ;;  %v549_v47 = vld [vmem:[%s2107_s5 + $0x340] sm:$0xff]  ;;  %v370_v59 = vld [vmem:[#allocation6 + $0xa8] sm:$0xff]  ;;  %v400_v1 = vld [vmem:[#allocation6 + $0x198] sm:$0xff] }
  0x4e   : > { %1611 = vmatpush.msra.mxu3 %v355_v9  ;;  %582 = vmatpush.msra.mxu0 %v355_v9  ;;  %v373_v48 = vld [vmem:[#allocation6 + $0xc0] sm:$0xff]  ;;  %v368_v2 = vld [vmem:[#allocation6 + $0x98] sm:$0xff]  ;;  %v383_v3 = vld [vmem:[#allocation6 + $0x110] sm:$0xff] }
  0x4f   : > { %1612 = vmatpush.msra.mxu1 %v354_v10  ;;  %1613 = vmatpush.msra.mxu2 %v354_v10  ;;  %v489_v57 = vld [vmem:[%s2107_s5 + $0x160] sm:$0xff]  ;;  %v399_v4 = vld [vmem:[#allocation6 + $0x190] sm:$0xff]  ;;  %v382_v8 = vld [vmem:[#allocation6 + $0x108] sm:$0xff] }
  0x50   : > { %1614 = vmatpush.msra.mxu3 %v354_v10  ;;  %583 = vmatpush.msra.mxu0 %v354_v10  ;;  %v521_v58 = vld [vmem:[%s2107_s5 + $0x260] sm:$0xff]  ;;  %v367_v5 = vld [vmem:[#allocation6 + $0x90] sm:$0xff]  ;;  %v398_v9 = vld [vmem:[#allocation6 + $0x188] sm:$0xff] }
  0x51   : > { %1615 = vmatpush.msra.mxu1 %v353_v11  ;;  %1616 = vmatpush.msra.mxu2 %v353_v11  ;;  %v385_v60 = vld [vmem:[#allocation6 + $0x120] sm:$0xff] }
  0x52   : > { %1617 = vmatpush.msra.mxu3 %v353_v11  ;;  %584 = vmatpush.msra.mxu0 %v353_v11  ;;  %v553_v61 = vld [vmem:[%s2107_s5 + $0x360] sm:$0xff]  ;;  %v366_v11 = vld [vmem:[#allocation6 + $0x88] sm:$0xff] }
  0x53   : > { %1618 = vmatpush.msra.mxu1 %v352_v12  ;;  %1619 = vmatpush.msra.mxu2 %v352_v12  ;;  %v401_v62 = vld [vmem:[#allocation6 + $0x1a0] sm:$0xff] }
  0x54   : > { %1620 = vmatpush.msra.mxu3 %v352_v12  ;;  %585 = vmatpush.msra.mxu0 %v352_v12  ;;  %v369_v63 = vld [vmem:[#allocation6 + $0xa0] sm:$0xff] }
  0x55   : > { %1621 = vmatpush.msra.mxu1 %v351_v13  ;;  %1622 = vmatpush.msra.mxu2 %v351_v13  ;;  %v493_v6 = vld [vmem:[%s2107_s5 + $0x180] sm:$0xff] }
  0x56   : > { %1623 = vmatpush.msra.mxu3 %v351_v13  ;;  %586 = vmatpush.msra.mxu0 %v351_v13  ;;  %v525_v7 = vld [vmem:[%s2107_s5 + $0x280] sm:$0xff] }
  0x57   : > { %1624 = vmatpush.msra.mxu1 %v350_v14  ;;  %1625 = vmatpush.msra.mxu2 %v350_v14  ;;  %v557_v10 = vld [vmem:[%s2107_s5 + $0x380] sm:$0xff] }
  0x58   : > { %1626 = vmatpush.msra.mxu3 %v350_v14  ;;  %587 = vmatpush.msra.mxu0 %v350_v14  ;;  %v381_v12 = vld [vmem:[#allocation6 + $0x100] sm:$0xff] }
  0x59   : > { %1627 = vmatpush.msra.mxu1 %v349_v15  ;;  %1628 = vmatpush.msra.mxu2 %v349_v15  ;;  %v397_v13 = vld [vmem:[#allocation6 + $0x180] sm:$0xff] }
  0x5a   : > { %613 = vmatmul.f32.vlgmr.msra.gmra.mxu1 %v477_v16  ;;  %637 = vmatmul.f32.vlgmr.msra.gmra.mxu2 %v509_v17  ;;  %v365_v14 = vld [vmem:[#allocation6 + $0x80] sm:$0xff] }
  0x5b   : > { %799 = vmatpush.msrb.mxu2 %v396_v18  ;;  %1629 = vmatpush.msra.mxu3 %v349_v15  ;;  %v497_v16 = vld [vmem:[%s2107_s5 + $0x1a0] sm:$0xff] }
  0x5c   : > { %661 = vmatmul.f32.vlgmr.msra.gmra.mxu3 %v541_v19  ;;  %686 = vmatpush.msrb.mxu1 %v380_v20  ;;  %v529_v17 = vld [vmem:[%s2107_s5 + $0x2a0] sm:$0xff] }
  0x5d   : > { %912 = vmatpush.msrb.mxu3 %v412_v21  ;;  %800 = vmatpush.msrb.mxu2 %v395_v22  ;;  %v561_v18 = vld [vmem:[%s2107_s5 + $0x3a0] sm:$0xff] }
  0x5e   : > { %687 = vmatpush.msrb.mxu1 %v379_v23  ;;  %588 = vmatpush.msra.mxu0 %v349_v15  ;;  %v445_v15 = vld [vmem:[%s2107_s5] sm:$0xff] }
  0x5f   : > { %913 = vmatpush.msrb.mxu3 %v411_v24  ;;  %801 = vmatpush.msrb.mxu2 %v394_v25  ;;  %v449_v19 = vld [vmem:[%s2107_s5 + $0x20] sm:$0xff] }
  0x60   : > { %688 = vmatpush.msrb.mxu1 %v378_v26  ;;  %589 = vmatmul.f32.vlgmr.msra.gmra.mxu0 %v445_v15  ;;  %v501_v20 = vld [vmem:[%s2107_s5 + $0x1c0] sm:$0xff]  ;;  %v487_v15 = vld [vmem:[%s2107_s5 + $0x150] sm:$0xff] }
  0x61   : > { %914 = vmatpush.msrb.mxu3 %v410_v27  ;;  %802 = vmatpush.msrb.mxu2 %v393_v28  ;;  %v533_v21 = vld [vmem:[%s2107_s5 + $0x2c0] sm:$0xff]  ;;  %v446_v28 = vld [vmem:[%s2107_s5 + $0x8] sm:$0xff] }
  0x62   : > { %616 = vmatmul.f32.gmra.mxu1 %v481_v29  ;;  %640 = vmatmul.f32.gmra.mxu2 %v513_v30  ;;  %v565_v22 = vld [vmem:[%s2107_s5 + $0x3c0] sm:$0xff]  ;;  %v447_v29 = vld [vmem:[%s2107_s5 + $0x10] sm:$0xff]  ;;  %v448_v30 = vld [vmem:[%s2107_s5 + $0x18] sm:$0xff] }
  0x63   : > { %915 = vmatpush.msrb.mxu3 %v409_v31  ;;  %689 = vmatpush.msrb.mxu1 %v377_v32  ;;  %v453_v23 = vld [vmem:[%s2107_s5 + $0x40] sm:$0xff]  ;;  %v450_v32 = vld [vmem:[%s2107_s5 + $0x28] sm:$0xff] }
  0x64   : > { %664 = vmatmul.f32.gmra.mxu3 %v545_v33  ;;  %803 = vmatpush.msrb.mxu2 %v392_v34  ;;  %v505_v24 = vld [vmem:[%s2107_s5 + $0x1e0] sm:$0xff]  ;;  %v451_v33 = vld [vmem:[%s2107_s5 + $0x30] sm:$0xff]  ;;  %v452_v34 = vld [vmem:[%s2107_s5 + $0x38] sm:$0xff] }
  0x65   : > { %916 = vmatpush.msrb.mxu3 %v408_v35  ;;  %690 = vmatpush.msrb.mxu1 %v376_v36  ;;  %v537_v25 = vld [vmem:[%s2107_s5 + $0x2e0] sm:$0xff]  ;;  %v454_v36 = vld [vmem:[%s2107_s5 + $0x48] sm:$0xff] }
  0x66   : > { %804 = vmatpush.msrb.mxu2 %v391_v37  ;;  %v569_v26 = vld [vmem:[%s2107_s5 + $0x3e0] sm:$0xff]  ;;  %v455_v37 = vld [vmem:[%s2107_s5 + $0x50] sm:$0xff] }
  0x67   : > { %917 = vmatpush.msrb.mxu3 %v407_v38  ;;  %691 = vmatpush.msrb.mxu1 %v375_v39  ;;  %v457_v27 = vld [vmem:[%s2107_s5 + $0x60] sm:$0xff]  ;;  %v456_v38 = vld [vmem:[%s2107_s5 + $0x58] sm:$0xff] }
  0x68   : > { %805 = vmatpush.msrb.mxu2 %v390_v40  ;;  %592 = vmatmul.f32.gmra.mxu0 %v449_v19  ;;  %v461_v31 = vld [vmem:[%s2107_s5 + $0x80] sm:$0xff]  ;;  %v458_v40 = vld [vmem:[%s2107_s5 + $0x68] sm:$0xff] }
  0x69   : > { %918 = vmatpush.msrb.mxu3 %v406_v41  ;;  %692 = vmatpush.msrb.mxu1 %v374_v42  ;;  %v465_v35 = vld [vmem:[%s2107_s5 + $0xa0] sm:$0xff]  ;;  %v459_v41 = vld [vmem:[%s2107_s5 + $0x70] sm:$0xff]  ;;  %v460_v42 = vld [vmem:[%s2107_s5 + $0x78] sm:$0xff] }
  0x6a   : > { %619 = vmatmul.f32.gmra.mxu1 %v485_v43  ;;  %643 = vmatmul.f32.gmra.mxu2 %v517_v44  ;;  %v469_v39 = vld [vmem:[%s2107_s5 + $0xc0] sm:$0xff]  ;;  %v462_v44 = vld [vmem:[%s2107_s5 + $0x88] sm:$0xff] }
  0x6b   : > { %806 = vmatpush.msrb.mxu2 %v389_v45  ;;  %919 = vmatpush.msrb.mxu3 %v405_v46  ;;  %v473_v43 = vld [vmem:[%s2107_s5 + $0xe0] sm:$0xff]  ;;  %v463_v45 = vld [vmem:[%s2107_s5 + $0x90] sm:$0xff]  ;;  %v464_v46 = vld [vmem:[%s2107_s5 + $0x98] sm:$0xff] }
  0x6c   : > { %667 = vmatmul.f32.gmra.mxu3 %v549_v47  ;;  %693 = vmatpush.msrb.mxu1 %v373_v48  ;;  %v466_v47 = vld [vmem:[%s2107_s5 + $0xa8] sm:$0xff]  ;;  %v467_v48 = vld [vmem:[%s2107_s5 + $0xb0] sm:$0xff] }
  0x6d   : > { %807 = vmatpush.msrb.mxu2 %v388_v49  ;;  %920 = vmatpush.msrb.mxu3 %v404_v50  ;;  %v468_v49 = vld [vmem:[%s2107_s5 + $0xb8] sm:$0xff]  ;;  %v1257_v19 = vld [vmem:[#allocation9 + $0x28] sm:$0xff] }
  0x6e   : > { %694 = vmatpush.msrb.mxu1 %v372_v51  ;;  %v1267_v50 = vld [vmem:[#allocation9 + $0x78] sm:$0xff]  ;;  %v470_v51 = vld [vmem:[%s2107_s5 + $0xc8] sm:$0xff] }
  0x6f   : > { %808 = vmatpush.msrb.mxu2 %v387_v52  ;;  %921 = vmatpush.msrb.mxu3 %v403_v53  ;;  %v471_v52 = vld [vmem:[%s2107_s5 + $0xd0] sm:$0xff]  ;;  %v472_v53 = vld [vmem:[%s2107_s5 + $0xd8] sm:$0xff] }
  0x70   : > { %695 = vmatpush.msrb.mxu1 %v371_v54  ;;  %595 = vmatmul.f32.gmra.mxu0 %v453_v23  ;;  %v1266_v54 = vld [vmem:[#allocation9 + $0x70] sm:$0xff] }
  0x71   : > { %809 = vmatpush.msrb.mxu2 %v386_v55  ;;  %922 = vmatpush.msrb.mxu3 %v402_v56  ;;  %v1265_v55 = vld [vmem:[#allocation9 + $0x68] sm:$0xff]  ;;  %v491_v23 = vld [vmem:[%s2107_s5 + $0x170] sm:$0xff] }
  0x72   : > { %622 = vmatmul.f32.gmra.mxu1 %v489_v57  ;;  %646 = vmatmul.f32.gmra.mxu2 %v521_v58  ;;  %v474_v56 = vld [vmem:[%s2107_s5 + $0xe8] sm:$0xff]  ;;  %v475_v57 = vld [vmem:[%s2107_s5 + $0xf0] sm:$0xff]  ;;  %v476_v58 = vld [vmem:[%s2107_s5 + $0xf8] sm:$0xff] }
  0x73   : > { %696 = vmatpush.msrb.mxu1 %v370_v59  ;;  %810 = vmatpush.msrb.mxu2 %v385_v60  ;;  %v1264_v59 = vld [vmem:[#allocation9 + $0x60] sm:$0xff]  ;;  %v1263_v60 = vld [vmem:[#allocation9 + $0x58] sm:$0xff] }
  0x74   : > { %670 = vmatmul.f32.gmra.mxu3 %v553_v61  ;;  %1268 = vmatpush.msrb.mxu0 %v1267_v50 }
  0x75   : > { %923 = vmatpush.msrb.mxu3 %v401_v62  ;;  %697 = vmatpush.msrb.mxu1 %v369_v63  ;;  %v478_v62 = vld [vmem:[%s2107_s5 + $0x108] sm:$0xff]  ;;  %v479_v63 = vld [vmem:[%s2107_s5 + $0x110] sm:$0xff] }
  0x76   : > { %811 = vmatpush.msrb.mxu2 %v384_v0  ;;  %1269 = vmatpush.msrb.mxu0 %v1266_v54  ;;  %v480_v0 = vld [vmem:[%s2107_s5 + $0x118] sm:$0xff] }
  0x77   : > { %924 = vmatpush.msrb.mxu3 %v400_v1  ;;  %698 = vmatpush.msrb.mxu1 %v368_v2  ;;  %v1262_v1 = vld [vmem:[#allocation9 + $0x50] sm:$0xff]  ;;  %v508_v54 = vld [vmem:[%s2107_s5 + $0x1f8] sm:$0xff] }
  0x78   : > { %812 = vmatpush.msrb.mxu2 %v383_v3  ;;  %598 = vmatmul.f32.gmra.mxu0 %v457_v27  ;;  %v1261_v3 = vld [vmem:[#allocation9 + $0x48] sm:$0xff]  ;;  %v1255_v27 = vld [vmem:[#allocation9 + $0x18] sm:$0xff] }
  0x79   : > { %925 = vmatpush.msrb.mxu3 %v399_v4  ;;  %699 = vmatpush.msrb.mxu1 %v367_v5 }
  0x7a   : > { %625 = vmatmul.f32.gmra.mxu1 %v493_v6  ;;  %649 = vmatmul.f32.gmra.mxu2 %v525_v7  ;;  %v482_v6 = vld [vmem:[%s2107_s5 + $0x128] sm:$0xff]  ;;  %v483_v7 = vld [vmem:[%s2107_s5 + $0x130] sm:$0xff] }
  0x7b   : > { %813 = vmatpush.msrb.mxu2 %v382_v8  ;;  %926 = vmatpush.msrb.mxu3 %v398_v9  ;;  %v484_v8 = vld [vmem:[%s2107_s5 + $0x138] sm:$0xff]  ;;  %v1260_v9 = vld [vmem:[#allocation9 + $0x40] sm:$0xff] }
  0x7c   : > { %673 = vmatmul.f32.gmra.mxu3 %v557_v10  ;;  %700 = vmatpush.msrb.mxu1 %v366_v11  ;;  %v1259_v11 = vld [vmem:[#allocation9 + $0x38] sm:$0xff] }
  0x7d   : > { %814 = vmatpush.msrb.mxu2 %v381_v12  ;;  %927 = vmatpush.msrb.mxu3 %v397_v13 }
  0x7e   : > { %701 = vmatpush.msrb.mxu1 %v365_v14  ;;  %1270 = vmatpush.msrb.mxu0 %v1265_v55  ;;  %v486_v14 = vld [vmem:[%s2107_s5 + $0x148] sm:$0xff] }
  0x80   : > { %601 = vmatmul.f32.gmra.mxu0 %v461_v31  ;;  %v495_v31 = vld [vmem:[%s2107_s5 + $0x190] sm:$0xff] }
  0x81   : > { %1271 = vmatpush.msrb.mxu0 %v1264_v59  ;;  %v510_v59 = vld [vmem:[%s2107_s5 + $0x208] sm:$0xff] }
  0x82   : > { %628 = vmatmul.f32.gmra.mxu1 %v497_v16  ;;  %652 = vmatmul.f32.gmra.mxu2 %v529_v17  ;;  %v488_v16 = vld [vmem:[%s2107_s5 + $0x158] sm:$0xff]  ;;  %v1258_v17 = vld [vmem:[#allocation9 + $0x30] sm:$0xff] }
  0x83   : > { %1272 = vmatpush.msrb.mxu0 %v1263_v60  ;;  %v511_v60 = vld [vmem:[%s2107_s5 + $0x210] sm:$0xff] }
  0x84   : > { %676 = vmatmul.f32.gmra.mxu3 %v561_v18 }
  0x85   : > { %1273 = vmatpush.msrb.mxu0 %v1262_v1 }
  0x87   : > { %1274 = vmatpush.msrb.mxu0 %v1261_v3  ;;  %v1156_v3 = vld [vmem:[%s2120_s28] sm:$0xff] }
  0x88   : > { %604 = vmatmul.f32.gmra.mxu0 %v465_v35  ;;  %v1253_v35 = vld [vmem:[#allocation9 + $0x8] sm:$0xff] }
  0x89   : > { %1275 = vmatpush.msrb.mxu0 %v1260_v9  ;;  %v514_v9 = vld [vmem:[%s2107_s5 + $0x228] sm:$0xff] }
  0x8a   : > { %631 = vmatmul.f32.gmra.mxu1 %v501_v20  ;;  %655 = vmatmul.f32.gmra.mxu2 %v533_v21 }
  0x8b   : > { %1276 = vmatpush.msrb.mxu0 %v1259_v11  ;;  %v515_v11 = vld [vmem:[%s2107_s5 + $0x230] sm:$0xff] }
  0x8c   : > { %679 = vmatmul.f32.gmra.mxu3 %v565_v22  ;;  %v490_v22 = vld [vmem:[%s2107_s5 + $0x168] sm:$0xff] }
  0x8d   : > { %1277 = vmatpush.msrb.mxu0 %v1258_v17 }
  0x8f   : > { %1278 = vmatpush.msrb.mxu0 %v1257_v19 }
  0x90   : > { %607 = vmatmul.f32.gmra.mxu0 %v469_v39  ;;  %v499_v39 = vld [vmem:[%s2107_s5 + $0x1b0] sm:$0xff] }
  0x92   : > { %634 = vmatmul.f32.gmra.mxu1 %v505_v24  ;;  %658 = vmatmul.f32.gmra.mxu2 %v537_v25  ;;  %v492_v24 = vld [vmem:[%s2107_s5 + $0x178] sm:$0xff]  ;;  %v1256_v25 = vld [vmem:[#allocation9 + $0x20] sm:$0xff] }
  0x93   : > { %1279 = vmatpush.msrb.mxu0 %v1256_v25 }
  0x94   : > { %682 = vmatmul.f32.gmra.mxu3 %v569_v26 }
  0x95   : > { %1280 = vmatpush.msrb.mxu0 %v1255_v27 }
  0x98   : > { %610 = vmatmul.f32.gmra.mxu0 %v473_v43 }
  0x9a   : > { %702 = vmatmul.f32.vlgmr.msrb.gmra.mxu1 %v446_v28  ;;  %815 = vmatmul.f32.vlgmr.msrb.gmra.mxu2 %v447_v29 }
  0x9c   : > { %928 = vmatmul.f32.vlgmr.msrb.gmra.mxu3 %v448_v30  ;;  %v494_v30 = vld [vmem:[%s2107_s5 + $0x188] sm:$0xff] }
  0xa2   : > { %705 = vmatmul.f32.gmra.mxu1 %v450_v32  ;;  %818 = vmatmul.f32.gmra.mxu2 %v451_v33  ;;  %v496_v32 = vld [vmem:[%s2107_s5 + $0x198] sm:$0xff]  ;;  %v1254_v33 = vld [vmem:[#allocation9 + $0x10] sm:$0xff] }
  0xa3   : > { %1281 = vmatpush.msrb.mxu0 %v1254_v33  ;;  %v519_v33 = vld [vmem:[%s2107_s5 + $0x250] sm:$0xff] }
  0xa4   : > { %931 = vmatmul.f32.gmra.mxu3 %v452_v34 }
  0xa5   : > { %1282 = vmatpush.msrb.mxu0 %v1253_v35 }
  0xaa   : > { %708 = vmatmul.f32.gmra.mxu1 %v454_v36  ;;  %821 = vmatmul.f32.gmra.mxu2 %v455_v37 }
  0xac   : > { %934 = vmatmul.f32.gmra.mxu3 %v456_v38  ;;  %v498_v38 = vld [vmem:[%s2107_s5 + $0x1a8] sm:$0xff] }
  0xb2   : > { %711 = vmatmul.f32.gmra.mxu1 %v458_v40  ;;  %824 = vmatmul.f32.gmra.mxu2 %v459_v41  ;;  %v500_v40 = vld [vmem:[%s2107_s5 + $0x1b8] sm:$0xff]  ;;  %v1252_v41 = vld [vmem:[#allocation9] sm:$0xff] }
  0xb3   : > { %1283 = vmatpush.msrb.mxu0 %v1252_v41 }
  0xb4   : > { %937 = vmatmul.f32.gmra.mxu3 %v460_v42 }
  0xba   : > { %714 = vmatmul.f32.gmra.mxu1 %v462_v44  ;;  %827 = vmatmul.f32.gmra.mxu2 %v463_v45  ;;  %v502_v45 = vld [vmem:[%s2107_s5 + $0x1c8] sm:$0xff] }
  0xbc   : > { %940 = vmatmul.f32.gmra.mxu3 %v464_v46  ;;  %v503_v46 = vld [vmem:[%s2107_s5 + $0x1d0] sm:$0xff] }
  0xc2   : > { %717 = vmatmul.f32.gmra.mxu1 %v466_v47  ;;  %830 = vmatmul.f32.gmra.mxu2 %v467_v48  ;;  %v504_v48 = vld [vmem:[%s2107_s5 + $0x1d8] sm:$0xff] }
  0xc4   : > { %943 = vmatmul.f32.gmra.mxu3 %v468_v49 }
  0xca   : > { %720 = vmatmul.f32.gmra.mxu1 %v470_v51  ;;  %833 = vmatmul.f32.gmra.mxu2 %v471_v52  ;;  %v506_v52 = vld [vmem:[%s2107_s5 + $0x1e8] sm:$0xff] }
  0xcc   : > { %946 = vmatmul.f32.gmra.mxu3 %v472_v53  ;;  %v507_v53 = vld [vmem:[%s2107_s5 + $0x1f0] sm:$0xff] }
  0xd2   : > { %723 = vmatmul.f32.gmra.mxu1 %v474_v56  ;;  %836 = vmatmul.f32.gmra.mxu2 %v475_v57 }
  0xd4   : > { %949 = vmatmul.f32.gmra.mxu3 %v476_v58 }
  0xd7   : > { %v2186_v61 = vpop.f32.mrf.mxu1 }
  0xda   : > { %726 = vmatmul.f32.gmra.mxu1 %v478_v62  ;;  %839 = vmatmul.f32.gmra.mxu2 %v479_v63  ;;  %v512_v62 = vld [vmem:[%s2107_s5 + $0x218] sm:$0xff] }
  0xdc   : > { %952 = vmatmul.f32.gmra.mxu3 %v480_v0 }
  0xdd   : > { %v2191_v2 = vpop.f32.mrf.mxu2  ;;  %v590_v47 = vpop.f32.mrf.mxu0 }
  0xdf   : > { %v2193_v4 = vpop.f32.mrf.mxu1  ;;  %v2195_v5 = vpop.f32.mrf.mxu3 }
  0xe2   : > { %729 = vmatmul.f32.gmra.mxu1 %v482_v6  ;;  %842 = vmatmul.f32.gmra.mxu2 %v483_v7 }
  0xe4   : > { %955 = vmatmul.f32.gmra.mxu3 %v484_v8 }
  0xe5   : > { %v2200_v10 = vpop.f32.mrf.mxu2  ;;  %v593_v55 = vpop.f32.mrf.mxu0 }
  0xe7   : > { %v2202_v12 = vpop.f32.mrf.mxu1  ;;  %v2204_v13 = vpop.f32.mrf.mxu3 }
  0xea   : > { %732 = vmatmul.f32.gmra.mxu1 %v486_v14  ;;  %845 = vmatmul.f32.gmra.mxu2 %v487_v15  ;;  %v1188_v15 = vmul.f32 0.1, %v1156_v3 }
  0xec   : > { %958 = vmatmul.f32.gmra.mxu3 %v488_v16  ;;  %v516_v16 = vld [vmem:[%s2107_s5 + $0x238] sm:$0xff] }
  0xed   : > { %v2209_v18 = vpop.f32.mrf.mxu2  ;;  %v596_v0 = vpop.f32.mrf.mxu0 }
  0xef   : > { %v2211_v20 = vpop.f32.mrf.mxu1  ;;  %v2213_v21 = vpop.f32.mrf.mxu3 }
  0xf2   : > { %735 = vmatmul.f32.gmra.mxu1 %v490_v22  ;;  %848 = vmatmul.f32.gmra.mxu2 %v491_v23 }
  0xf4   : > { %961 = vmatmul.f32.gmra.mxu3 %v492_v24  ;;  %v1157_v24 = vld [vmem:[%s2120_s28 + $0x8] sm:$0xff] }
  0xf5   : > { %v2218_v26 = vpop.f32.mrf.mxu2  ;;  %v599_v27 = vpop.f32.mrf.mxu0 }
  0xf7   : > { %v2220_v28 = vpop.f32.mrf.mxu1  ;;  %v2222_v29 = vpop.f32.mrf.mxu3 }
  0xfa   : > { %738 = vmatmul.f32.gmra.mxu1 %v494_v30  ;;  %851 = vmatmul.f32.gmra.mxu2 %v495_v31 }
  0xfc   : > { %964 = vmatmul.f32.gmra.mxu3 %v496_v32  ;;  %v518_v32 = vld [vmem:[%s2107_s5 + $0x248] sm:$0xff] }
  0xfd   : > { %v2227_v34 = vpop.f32.mrf.mxu2 }
  0xff   : > { %v2229_v36 = vpop.f32.mrf.mxu1  ;;  %v2231_v37 = vpop.f32.mrf.mxu3 }
 0x102   : > { %741 = vmatmul.f32.gmra.mxu1 %v498_v38  ;;  %854 = vmatmul.f32.gmra.mxu2 %v499_v39  ;;  %v1189_v38 = vmul.f32 0.1, %v1157_v24  ;;  %v520_v39 = vld [vmem:[%s2107_s5 + $0x258] sm:$0xff] }
 0x104   : > { %967 = vmatmul.f32.gmra.mxu3 %v500_v40 }
 0x105   : > { %v2236_v42 = vpop.f32.mrf.mxu2 }
 0x107   : > { %v2238_v43 = vpop.f32.mrf.mxu1  ;;  %v2240_v44 = vpop.f32.mrf.mxu3 }
 0x10a   : > { %744 = vmatmul.f32.gmra.mxu1 %v502_v45  ;;  %857 = vmatmul.f32.gmra.mxu2 %v503_v46 }
 0x10c   : > { %970 = vmatmul.f32.gmra.mxu3 %v504_v48 }
 0x10d   : > { %v2245_v49 = vpop.f32.mrf.mxu2 }
 0x10f   : > { %v2247_v50 = vpop.f32.mrf.mxu1  ;;  %v2249_v51 = vpop.f32.mrf.mxu3 }
 0x112   : > { %747 = vmatmul.f32.gmra.mxu1 %v506_v52  ;;  %860 = vmatmul.f32.gmra.mxu2 %v507_v53 }
 0x114   : > { %973 = vmatmul.f32.gmra.mxu3 %v508_v54  ;;  %v522_v54 = vld [vmem:[%s2107_s5 + $0x268] sm:$0xff] }
 0x115   : > { %v2254_v56 = vpop.f32.mrf.mxu2 }
 0x117   : > { %v2256_v57 = vpop.f32.mrf.mxu3  ;;  %v703_v58 = vpop.f32.mrf.mxu1 }
 0x118   : > { %v704_v63 = vadd.f32 %v703_v58, %v590_v47  ;;  %v1158_v47 = vld [vmem:[%s2120_s28 + $0x10] sm:$0xff] }
 0x11a   : > { %750 = vmatmul.f32.gmra.mxu1 %v510_v59  ;;  %863 = vmatmul.f32.gmra.mxu2 %v511_v60  ;;  %v1190_v59 = vmul.f32 0.1, %v1158_v47  ;;  %v602_v60 = vpop.f32.mrf.mxu0 }
 0x11c   : > { %976 = vmatmul.f32.gmra.mxu3 %v512_v62  ;;  %v524_v62 = vld [vmem:[%s2107_s5 + $0x278] sm:$0xff] }
 0x11d   : > { %v816_v1 = vpop.f32.mrf.mxu2 }
 0x11e   : > { %v817_v6 = vadd.f32 %v816_v1, %v704_v63 }
 0x11f   : > { %v706_v7 = vpop.f32.mrf.mxu1  ;;  %v929_v8 = vpop.f32.mrf.mxu3 }
 0x120   : > { %v930_v14 = vadd.f32 %v929_v8, %v817_v6  ;;  %v707_v19 = vadd.f32 %v706_v7, %v593_v55  ;;  %v523_v55 = vld [vmem:[%s2107_s5 + $0x270] sm:$0xff]  ;;  %v1159_v6 = vld [vmem:[%s2120_s28 + $0x18] sm:$0xff] }
 0x122   : > { %v1124_v17 = vmul.f32 0.9, %v930_v14  ;;  %753 = vmatmul.f32.gmra.mxu1 %v514_v9  ;;  %866 = vmatmul.f32.gmra.mxu2 %v515_v11  ;;  %v526_v11 = vld [vmem:[%s2107_s5 + $0x288] sm:$0xff]  ;;  %v527_v14 = vld [vmem:[%s2107_s5 + $0x290] sm:$0xff] }
 0x124   : > { %979 = vmatmul.f32.gmra.mxu3 %v516_v16  ;;  %v1220_v22 = vadd.f32 %v1188_v15, %v1124_v17  ;;  %v1191_v16 = vmul.f32 0.1, %v1159_v6  ;;  %v528_v17 = vld [vmem:[%s2107_s5 + $0x298] sm:$0xff] }
 0x125   : > { %v819_v23 = vpop.f32.mrf.mxu2 }
 0x126   : > { %v820_v25 = vadd.f32 %v819_v23, %v707_v19  ;;  %1284 = vmatmul.f32.vlgmr.msrb.gmra.mxu0 %v1220_v22  ;;  %v605_v23 = vpop.f32.mrf.mxu0 }
 0x127   : > { %v709_v30 = vpop.f32.mrf.mxu1  ;;  %v932_v31 = vpop.f32.mrf.mxu3 }
 0x128   : > { %v933_v35 = vadd.f32 %v932_v31, %v820_v25  ;;  %v710_v41 = vadd.f32 %v709_v30, %v596_v0 }
 0x12a   : > { %v1125_v40 = vmul.f32 0.9, %v933_v35  ;;  %756 = vmatmul.f32.gmra.mxu1 %v518_v32  ;;  %869 = vmatmul.f32.gmra.mxu2 %v519_v33  ;;  %v530_v33 = vld [vmem:[%s2107_s5 + $0x2a8] sm:$0xff]  ;;  %v531_v35 = vld [vmem:[%s2107_s5 + $0x2b0] sm:$0xff] }
 0x12c   : > { %982 = vmatmul.f32.gmra.mxu3 %v520_v39  ;;  %v1221_v45 = vadd.f32 %v1189_v38, %v1125_v40  ;;  %v532_v40 = vld [vmem:[%s2107_s5 + $0x2b8] sm:$0xff] }
 0x12d   : > { %v822_v46 = vpop.f32.mrf.mxu2 }
 0x12e   : > { %v823_v48 = vadd.f32 %v822_v46, %v710_v41  ;;  %1287 = vmatmul.f32.gmra.mxu0 %v1221_v45  ;;  %v608_v47 = vpop.f32.mrf.mxu0 }
 0x12f   : > { %v712_v52 = vpop.f32.mrf.mxu1  ;;  %v935_v53 = vpop.f32.mrf.mxu3 }
 0x130   : > { %v936_v58 = vadd.f32 %v935_v53, %v823_v48  ;;  %v713_v0 = vadd.f32 %v712_v52, %v599_v27  ;;  %v1160_v27 = vld [vmem:[%s2120_s28 + $0x20] sm:$0xff]  ;;  %v1161_v52 = vld [vmem:[%s2120_s28 + $0x28] sm:$0xff] }
 0x131   : > { %v1192_v39 = vmul.f32 0.1, %v1160_v27 }
 0x132   : > { %v1126_v63 = vmul.f32 0.9, %v936_v58  ;;  %759 = vmatmul.f32.gmra.mxu1 %v522_v54  ;;  %872 = vmatmul.f32.gmra.mxu2 %v523_v55  ;;  %v534_v58 = vld [vmem:[%s2107_s5 + $0x2c8] sm:$0xff] }
 0x134   : > { %985 = vmatmul.f32.gmra.mxu3 %v524_v62  ;;  %v1222_v1 = vadd.f32 %v1190_v59, %v1126_v63  ;;  %v535_v59 = vld [vmem:[%s2107_s5 + $0x2d0] sm:$0xff]  ;;  %v1193_v62 = vmul.f32 0.1, %v1161_v52  ;;  %v536_v63 = vld [vmem:[%s2107_s5 + $0x2d8] sm:$0xff]  ;;  %v1164_v52 = vld [vmem:[%s2120_s28 + $0x40] sm:$0xff] }
 0x135   : > { %v825_v3 = vpop.f32.mrf.mxu2 }
 0x136   : > { %v826_v7 = vadd.f32 %v825_v3, %v713_v0  ;;  %1290 = vmatmul.f32.gmra.mxu0 %v1222_v1 }
 0x137   : > { %v715_v8 = vpop.f32.mrf.mxu1  ;;  %v938_v9 = vpop.f32.mrf.mxu3 }
 0x138   : > { %v939_v15 = vadd.f32 %v938_v9, %v826_v7  ;;  %v716_v22 = vadd.f32 %v715_v8, %v602_v60  ;;  %v1162_v7 = vld [vmem:[%s2120_s28 + $0x30] sm:$0xff]  ;;  %v611_v9 = vpop.f32.mrf.mxu0 }
 0x13a   : > { %v1127_v19 = vmul.f32 0.9, %v939_v15  ;;  %762 = vmatmul.f32.gmra.mxu1 %v526_v11  ;;  %875 = vmatmul.f32.gmra.mxu2 %v527_v14  ;;  %v538_v15 = vld [vmem:[%s2107_s5 + $0x2e8] sm:$0xff] }
 0x13c   : > { %988 = vmatmul.f32.gmra.mxu3 %v528_v17  ;;  %v1223_v24 = vadd.f32 %v1191_v16, %v1127_v19  ;;  %v539_v16 = vld [vmem:[%s2107_s5 + $0x2f0] sm:$0xff]  ;;  %v1194_v19 = vmul.f32 0.1, %v1162_v7 }
 0x13d   : > { %v828_v25 = vpop.f32.mrf.mxu2 }
 0x13e   : > { %v829_v30 = vadd.f32 %v828_v25, %v716_v22  ;;  %1293 = vmatmul.f32.gmra.mxu0 %v1223_v24  ;;  %v540_v22 = vld [vmem:[%s2107_s5 + $0x2f8] sm:$0xff] }
 0x13f   : > { %v718_v31 = vpop.f32.mrf.mxu1  ;;  %v941_v32 = vpop.f32.mrf.mxu3 }
 0x140   : > { %v942_v38 = vadd.f32 %v941_v32, %v829_v30  ;;  %v719_v45 = vadd.f32 %v718_v31, %v605_v23  ;;  %v1163_v30 = vld [vmem:[%s2120_s28 + $0x38] sm:$0xff] }
 0x142   : > { %v1128_v41 = vmul.f32 0.9, %v942_v38  ;;  %765 = vmatmul.f32.gmra.mxu1 %v530_v33  ;;  %878 = vmatmul.f32.gmra.mxu2 %v531_v35  ;;  %v542_v35 = vld [vmem:[%s2107_s5 + $0x308] sm:$0xff]  ;;  %v543_v38 = vld [vmem:[%s2107_s5 + $0x310] sm:$0xff] }
 0x144   : > { %991 = vmatmul.f32.gmra.mxu3 %v532_v40  ;;  %v1224_v46 = vadd.f32 %v1192_v39, %v1128_v41  ;;  %v1195_v40 = vmul.f32 0.1, %v1163_v30  ;;  %v544_v41 = vld [vmem:[%s2107_s5 + $0x318] sm:$0xff] }
 0x145   : > { %v831_v48 = vpop.f32.mrf.mxu2 }
 0x146   : > { %v832_v53 = vadd.f32 %v831_v48, %v719_v45  ;;  %1296 = vmatmul.f32.gmra.mxu0 %v1224_v46 }
 0x147   : > { %v721_v54 = vpop.f32.mrf.mxu1  ;;  %v944_v55 = vpop.f32.mrf.mxu3 }
 0x148   : > { %v945_v60 = vadd.f32 %v944_v55, %v832_v53  ;;  %v722_v1 = vadd.f32 %v721_v54, %v608_v47 }
 0x14a   : > { %v1129_v0 = vmul.f32 0.9, %v945_v60  ;;  %768 = vmatmul.f32.gmra.mxu1 %v534_v58  ;;  %881 = vmatmul.f32.gmra.mxu2 %v535_v59  ;;  %v546_v58 = vld [vmem:[%s2107_s5 + $0x328] sm:$0xff]  ;;  %v547_v59 = vld [vmem:[%s2107_s5 + $0x330] sm:$0xff] }
 0x14c   : > { %994 = vmatmul.f32.gmra.mxu3 %v536_v63  ;;  %v1225_v3 = vadd.f32 %v1193_v62, %v1129_v0  ;;  %v1196_v62 = vmul.f32 0.1, %v1164_v52  ;;  %v548_v63 = vld [vmem:[%s2107_s5 + $0x338] sm:$0xff]  ;;  %v558_v52 = vld [vmem:[%s2107_s5 + $0x388] sm:$0xff] }
 0x14d   : > { %v834_v6 = vpop.f32.mrf.mxu2 }
 0x14e   : > { %v835_v8 = vadd.f32 %v834_v6, %v722_v1  ;;  %1299 = vmatmul.f32.gmra.mxu0 %v1225_v3  ;;  %v1165_v6 = vld [vmem:[%s2120_s28 + $0x48] sm:$0xff] }
 0x14f   : > { %v724_v11 = vpop.f32.mrf.mxu1  ;;  %v947_v14 = vpop.f32.mrf.mxu3 }
 0x150   : > { %v948_v17 = vadd.f32 %v947_v14, %v835_v8  ;;  %v725_v24 = vadd.f32 %v724_v11, %v611_v9  ;;  %v550_v11 = vld [vmem:[%s2107_s5 + $0x348] sm:$0xff]  ;;  %v551_v14 = vld [vmem:[%s2107_s5 + $0x350] sm:$0xff] }
 0x152   : > { %v1130_v23 = vmul.f32 0.9, %v948_v17  ;;  %771 = vmatmul.f32.gmra.mxu1 %v538_v15  ;;  %884 = vmatmul.f32.gmra.mxu2 %v539_v16  ;;  %v1197_v16 = vmul.f32 0.1, %v1165_v6  ;;  %v552_v17 = vld [vmem:[%s2107_s5 + $0x358] sm:$0xff]  ;;  %v563_v6 = vld [vmem:[%s2107_s5 + $0x3b0] sm:$0xff] }
 0x154   : > { %997 = vmatmul.f32.gmra.mxu3 %v540_v22  ;;  %v1226_v25 = vadd.f32 %v1194_v19, %v1130_v23 }
 0x155   : > { %v837_v27 = vpop.f32.mrf.mxu2 }
 0x156   : > { %v838_v31 = vadd.f32 %v837_v27, %v725_v24  ;;  %1302 = vmatmul.f32.gmra.mxu0 %v1226_v25  ;;  %v1166_v24 = vld [vmem:[%s2120_s28 + $0x50] sm:$0xff] }
 0x157   : > { %v727_v32 = vpop.f32.mrf.mxu1  ;;  %v950_v33 = vpop.f32.mrf.mxu3 }
 0x158   : > { %v951_v39 = vadd.f32 %v950_v33, %v838_v31  ;;  %v728_v46 = vadd.f32 %v727_v32, %v2186_v61  ;;  %v554_v31 = vld [vmem:[%s2107_s5 + $0x368] sm:$0xff]  ;;  %v555_v32 = vld [vmem:[%s2107_s5 + $0x370] sm:$0xff] }
 0x15a   : > { %v1131_v45 = vmul.f32 0.9, %v951_v39  ;;  %774 = vmatmul.f32.gmra.mxu1 %v542_v35  ;;  %887 = vmatmul.f32.gmra.mxu2 %v543_v38  ;;  %v1198_v35 = vmul.f32 0.1, %v1166_v24  ;;  %v556_v38 = vld [vmem:[%s2107_s5 + $0x378] sm:$0xff] }
 0x15c   : > { %1000 = vmatmul.f32.gmra.mxu3 %v544_v41  ;;  %v1227_v47 = vadd.f32 %v1195_v40, %v1131_v45  ;;  %v1167_v45 = vld [vmem:[%s2120_s28 + $0x58] sm:$0xff] }
 0x15d   : > { %v840_v48 = vpop.f32.mrf.mxu2 }
 0x15e   : > { %v841_v53 = vadd.f32 %v840_v48, %v728_v46  ;;  %1305 = vmatmul.f32.gmra.mxu0 %v1227_v47 }
 0x15f   : > { %v730_v54 = vpop.f32.mrf.mxu1  ;;  %v953_v55 = vpop.f32.mrf.mxu3 }
 0x160   : > { %v954_v60 = vadd.f32 %v953_v55, %v841_v53  ;;  %v731_v61 = vadd.f32 %v730_v54, %v2193_v4  ;;  %v559_v53 = vld [vmem:[%s2107_s5 + $0x390] sm:$0xff]  ;;  %v1199_v55 = vmul.f32 0.1, %v1167_v45 }
 0x162   : > { %v1132_v0 = vmul.f32 0.9, %v954_v60  ;;  %777 = vmatmul.f32.gmra.mxu1 %v546_v58  ;;  %890 = vmatmul.f32.gmra.mxu2 %v547_v59  ;;  %v560_v58 = vld [vmem:[%s2107_s5 + $0x398] sm:$0xff] }
 0x164   : > { %1003 = vmatmul.f32.gmra.mxu3 %v548_v63  ;;  %v1228_v1 = vadd.f32 %v1196_v62, %v1132_v0  ;;  %v1168_v63 = vld [vmem:[%s2120_s28 + $0x60] sm:$0xff] }
 0x165   : > { %v843_v3 = vpop.f32.mrf.mxu2 }
 0x166   : > { %v844_v7 = vadd.f32 %v843_v3, %v731_v61  ;;  %1308 = vmatmul.f32.gmra.mxu0 %v1228_v1  ;;  %v562_v3 = vld [vmem:[%s2107_s5 + $0x3a8] sm:$0xff] }
 0x167   : > { %v733_v8 = vpop.f32.mrf.mxu1  ;;  %v956_v9 = vpop.f32.mrf.mxu3 }
 0x168   : > { %v957_v15 = vadd.f32 %v956_v9, %v844_v7  ;;  %v734_v4 = vadd.f32 %v733_v8, %v2202_v12  ;;  %v1200_v8 = vmul.f32 0.1, %v1168_v63  ;;  %v564_v9 = vld [vmem:[%s2107_s5 + $0x3b8] sm:$0xff] }
 0x16a   : > { %v1133_v19 = vmul.f32 0.9, %v957_v15  ;;  %780 = vmatmul.f32.gmra.mxu1 %v550_v11  ;;  %893 = vmatmul.f32.gmra.mxu2 %v551_v14 }
 0x16c   : > { %1006 = vmatmul.f32.gmra.mxu3 %v552_v17  ;;  %v1229_v22 = vadd.f32 %v1197_v16, %v1133_v19  ;;  %v1169_v16 = vld [vmem:[%s2120_s28 + $0x68] sm:$0xff] }
 0x16d   : > { %v846_v23 = vpop.f32.mrf.mxu2 }
 0x16e   : > { %v847_v25 = vadd.f32 %v846_v23, %v734_v4  ;;  %1311 = vmatmul.f32.gmra.mxu0 %v1229_v22  ;;  %v566_v22 = vld [vmem:[%s2107_s5 + $0x3c8] sm:$0xff]  ;;  %v567_v23 = vld [vmem:[%s2107_s5 + $0x3d0] sm:$0xff] }
 0x16f   : > { %v736_v27 = vpop.f32.mrf.mxu1  ;;  %v959_v30 = vpop.f32.mrf.mxu3 }
 0x170   : > { %v960_v33 = vadd.f32 %v959_v30, %v847_v25  ;;  %v737_v12 = vadd.f32 %v736_v27, %v2211_v20  ;;  %v1201_v25 = vmul.f32 0.1, %v1169_v16  ;;  %v568_v27 = vld [vmem:[%s2107_s5 + $0x3d8] sm:$0xff] }
 0x172   : > { %v1134_v39 = vmul.f32 0.9, %v960_v33  ;;  %783 = vmatmul.f32.gmra.mxu1 %v554_v31  ;;  %896 = vmatmul.f32.gmra.mxu2 %v555_v32  ;;  %v1170_v33 = vld [vmem:[%s2120_s28 + $0x70] sm:$0xff] }
 0x173   : > { %v1202_v45 = vmul.f32 0.1, %v1170_v33 }
 0x174   : > { %1009 = vmatmul.f32.gmra.mxu3 %v556_v38  ;;  %v1230_v40 = vadd.f32 %v1198_v35, %v1134_v39 }
 0x175   : > { %v849_v41 = vpop.f32.mrf.mxu2 }
 0x176   : > { %v850_v46 = vadd.f32 %v849_v41, %v737_v12  ;;  %1314 = vmatmul.f32.gmra.mxu0 %v1230_v40  ;;  %v570_v12 = vld [vmem:[%s2107_s5 + $0x3e8] sm:$0xff]  ;;  %v571_v40 = vld [vmem:[%s2107_s5 + $0x3f0] sm:$0xff] }
 0x177   : > { %v739_v47 = vpop.f32.mrf.mxu1  ;;  %v962_v48 = vpop.f32.mrf.mxu3 }
 0x178   : > { %v963_v54 = vadd.f32 %v962_v48, %v850_v46  ;;  %v740_v20 = vadd.f32 %v739_v47, %v2220_v28  ;;  %v572_v46 = vld [vmem:[%s2107_s5 + $0x3f8] sm:$0xff] }
 0x17a   : > { %v1135_v59 = vmul.f32 0.9, %v963_v54  ;;  %786 = vmatmul.f32.gmra.mxu1 %v558_v52  ;;  %899 = vmatmul.f32.gmra.mxu2 %v559_v53  ;;  %v1171_v53 = vld [vmem:[%s2120_s28 + $0x78] sm:$0xff] }
 0x17c   : > { %1012 = vmatmul.f32.gmra.mxu3 %v560_v58  ;;  %v1231_v60 = vadd.f32 %v1199_v55, %v1135_v59 }
 0x17d   : > { %v852_v62 = vpop.f32.mrf.mxu2 }
 0x17e   : > { %v853_v0 = vadd.f32 %v852_v62, %v740_v20  ;;  %1317 = vmatmul.f32.gmra.mxu0 %v1231_v60  ;;  %v1203_v20 = vmul.f32 0.1, %v1171_v53 }
 0x17f   : > { %v742_v61 = vpop.f32.mrf.mxu1  ;;  %v965_v1 = vpop.f32.mrf.mxu3 }
 0x180   : > { %v966_v7 = vadd.f32 %v965_v1, %v853_v0  ;;  %v743_v28 = vadd.f32 %v742_v61, %v2229_v36  ;;  %v1172_v61 = vld [vmem:[%s2120_s28 + $0x80] sm:$0xff] }
 0x182   : > { %v1136_v11 = vmul.f32 0.9, %v966_v7  ;;  %789 = vmatmul.f32.gmra.mxu1 %v562_v3  ;;  %902 = vmatmul.f32.gmra.mxu2 %v563_v6  ;;  %v1204_v7 = vmul.f32 0.1, %v1172_v61 }
 0x184   : > { %1015 = vmatmul.f32.gmra.mxu3 %v564_v9  ;;  %v1232_v14 = vadd.f32 %v1200_v8, %v1136_v11 }
 0x185   : > { %v855_v15 = vpop.f32.mrf.mxu2 }
 0x186   : > { %v856_v17 = vadd.f32 %v855_v15, %v743_v28  ;;  %1320 = vmatmul.f32.gmra.mxu0 %v1232_v14  ;;  %v1173_v14 = vld [vmem:[%s2120_s28 + $0x88] sm:$0xff] }
 0x187   : > { %v745_v19 = vpop.f32.mrf.mxu1  ;;  %v968_v4 = vpop.f32.mrf.mxu3 }
 0x188   : > { %v969_v24 = vadd.f32 %v968_v4, %v856_v17  ;;  %v746_v36 = vadd.f32 %v745_v19, %v2238_v43  ;;  %v1205_v4 = vmul.f32 0.1, %v1173_v14 }
 0x18a   : > { %v1137_v30 = vmul.f32 0.9, %v969_v24  ;;  %792 = vmatmul.f32.gmra.mxu1 %v566_v22  ;;  %905 = vmatmul.f32.gmra.mxu2 %v567_v23 }
 0x18c   : > { %1018 = vmatmul.f32.gmra.mxu3 %v568_v27  ;;  %v1233_v31 = vadd.f32 %v1201_v25, %v1137_v30  ;;  %v1174_v27 = vld [vmem:[%s2120_s28 + $0x90] sm:$0xff] }
 0x18d   : > { %v858_v32 = vpop.f32.mrf.mxu2  ;;  %v1206_v33 = vmul.f32 0.1, %v1174_v27  ;;  %v1179_v27 = vld [vmem:[%s2120_s28 + $0xb8] sm:$0xff] }
 0x18e   : > { %v859_v35 = vadd.f32 %v858_v32, %v746_v36  ;;  %1323 = vmatmul.f32.gmra.mxu0 %v1233_v31 }
 0x18f   : > { %v748_v38 = vpop.f32.mrf.mxu1  ;;  %v971_v39 = vpop.f32.mrf.mxu3 }
 0x190   : > { %v972_v41 = vadd.f32 %v971_v39, %v859_v35  ;;  %v749_v43 = vadd.f32 %v748_v38, %v2247_v50 }
 0x192   : > { %v1138_v47 = vmul.f32 0.9, %v972_v41  ;;  %795 = vmatmul.f32.gmra.mxu1 %v570_v12  ;;  %908 = vmatmul.f32.gmra.mxu2 %v571_v40  ;;  %v1175_v40 = vld [vmem:[%s2120_s28 + $0x98] sm:$0xff] }
 0x194   : > { %1021 = vmatmul.f32.gmra.mxu3 %v572_v46  ;;  %v1234_v48 = vadd.f32 %v1202_v45, %v1138_v47 }
 0x195   : > { %v861_v52 = vpop.f32.mrf.mxu2 }
 0x196   : > { %v862_v54 = vadd.f32 %v861_v52, %v749_v43  ;;  %1326 = vmatmul.f32.gmra.mxu0 %v1234_v48  ;;  %v1207_v43 = vmul.f32 0.1, %v1175_v40 }
 0x197   : > { %v751_v55 = vpop.f32.mrf.mxu1  ;;  %v974_v58 = vpop.f32.mrf.mxu3 }
 0x198   : > { %v975_v59 = vadd.f32 %v974_v58, %v862_v54  ;;  %v752_v62 = vadd.f32 %v751_v55, %v2191_v2  ;;  %v1176_v55 = vld [vmem:[%s2120_s28 + $0xa0] sm:$0xff] }
 0x19a   : > { %v1139_v60 = vmul.f32 0.9, %v975_v59 }
 0x19c   : > { %v1235_v63 = vadd.f32 %v1203_v20, %v1139_v60 }
 0x19d   : > { %v864_v0 = vpop.f32.mrf.mxu2 }
 0x19e   : > { %v865_v1 = vadd.f32 %v864_v0, %v752_v62  ;;  %1329 = vmatmul.f32.gmra.mxu0 %v1235_v63  ;;  %v1208_v62 = vmul.f32 0.1, %v1176_v55 }
 0x19f   : > { %v754_v50 = vpop.f32.mrf.mxu1  ;;  %v977_v3 = vpop.f32.mrf.mxu3 }
 0x1a0   : > { %v978_v6 = vadd.f32 %v977_v3, %v865_v1  ;;  %v755_v11 = vadd.f32 %v754_v50, %v2200_v10  ;;  %v1177_v50 = vld [vmem:[%s2120_s28 + $0xa8] sm:$0xff] }
 0x1a2   : > { %v1140_v8 = vmul.f32 0.9, %v978_v6 }
 0x1a3   : > { %v1285_v9 = vpop.f32.mrf.mxu0 }
 0x1a4   : > { %v1236_v28 = vadd.f32 %v1204_v7, %v1140_v8  ;;  %1381 = vst [vmem:[%s2335_s21] sm:$0xff] %v1285_v9  ;;  %v1209_v9 = vmul.f32 0.1, %v1177_v50 }
 0x1a5   : > { %v867_v2 = vpop.f32.mrf.mxu2 }
 0x1a6   : > { %v868_v15 = vadd.f32 %v867_v2, %v755_v11  ;;  %1332 = vmatmul.f32.gmra.mxu0 %v1236_v28 }
 0x1a7   : > { %v757_v16 = vpop.f32.mrf.mxu1  ;;  %v980_v17 = vpop.f32.mrf.mxu3 }
 0x1a8   : > { %v981_v19 = vadd.f32 %v980_v17, %v868_v15  ;;  %v758_v10 = vadd.f32 %v757_v16, %v2209_v18  ;;  %v1178_v15 = vld [vmem:[%s2120_s28 + $0xb0] sm:$0xff] }
 0x1aa   : > { %v1141_v22 = vmul.f32 0.9, %v981_v19 }
 0x1ab   : > { %v1288_v23 = vpop.f32.mrf.mxu0 }
 0x1ac   : > { %v1237_v24 = vadd.f32 %v1205_v4, %v1141_v22  ;;  %1382 = vst [vmem:[%s2335_s21 + $0x8] sm:$0xff] %v1288_v23  ;;  %v1210_v22 = vmul.f32 0.1, %v1178_v15 }
 0x1ad   : > { %v870_v25 = vpop.f32.mrf.mxu2 }
 0x1ae   : > { %v871_v30 = vadd.f32 %v870_v25, %v758_v10  ;;  %1335 = vmatmul.f32.gmra.mxu0 %v1237_v24 }
 0x1af   : > { %v760_v36 = vpop.f32.mrf.mxu1  ;;  %v983_v31 = vpop.f32.mrf.mxu3 }
 0x1b0   : > { %v984_v32 = vadd.f32 %v983_v31, %v871_v30  ;;  %v761_v39 = vadd.f32 %v760_v36, %v2218_v26 }
 0x1b2   : > { %v1142_v35 = vmul.f32 0.9, %v984_v32 }
 0x1b3   : > { %v1291_v38 = vpop.f32.mrf.mxu0 }
 0x1b4   : > { %v1238_v12 = vadd.f32 %v1206_v33, %v1142_v35  ;;  %1383 = vst [vmem:[%s2335_s21 + $0x10] sm:$0xff] %v1291_v38  ;;  %v1211_v33 = vmul.f32 0.1, %v1179_v27 }
 0x1b5   : > { %v873_v18 = vpop.f32.mrf.mxu2 }
 0x1b6   : > { %v874_v41 = vadd.f32 %v873_v18, %v761_v39  ;;  %1338 = vmatmul.f32.gmra.mxu0 %v1238_v12  ;;  %v1180_v18 = vld [vmem:[%s2120_s28 + $0xc0] sm:$0xff] }
 0x1b7   : > { %v763_v45 = vpop.f32.mrf.mxu1  ;;  %v986_v46 = vpop.f32.mrf.mxu3 }
 0x1b8   : > { %v987_v47 = vadd.f32 %v986_v46, %v874_v41  ;;  %v764_v53 = vadd.f32 %v763_v45, %v2227_v34 }
 0x1ba   : > { %v1143_v48 = vmul.f32 0.9, %v987_v47  ;;  %v1212_v47 = vmul.f32 0.1, %v1180_v18 }
 0x1bb   : > { %v1294_v52 = vpop.f32.mrf.mxu0 }
 0x1bc   : > { %v1239_v54 = vadd.f32 %v1207_v43, %v1143_v48  ;;  %1384 = vst [vmem:[%s2335_s21 + $0x18] sm:$0xff] %v1294_v52 }
 0x1bd   : > { %v876_v26 = vpop.f32.mrf.mxu2 }
 0x1be   : > { %v877_v58 = vadd.f32 %v876_v26, %v764_v53  ;;  %1341 = vmatmul.f32.gmra.mxu0 %v1239_v54  ;;  %v1181_v54 = vld [vmem:[%s2120_s28 + $0xc8] sm:$0xff] }
 0x1bf   : > { %v766_v59 = vpop.f32.mrf.mxu1  ;;  %v989_v20 = vpop.f32.mrf.mxu3 }
 0x1c0   : > { %v990_v60 = vadd.f32 %v989_v20, %v877_v58  ;;  %v767_v61 = vadd.f32 %v766_v59, %v2236_v42  ;;  %v1213_v20 = vmul.f32 0.1, %v1181_v54 }
 0x1c2   : > { %v1144_v63 = vmul.f32 0.9, %v990_v60 }
 0x1c3   : > { %v1297_v0 = vpop.f32.mrf.mxu0 }
 0x1c4   : > { %v1240_v1 = vadd.f32 %v1208_v62, %v1144_v63  ;;  %1385 = vst [vmem:[%s2335_s21 + $0x20] sm:$0xff] %v1297_v0 }
 0x1c5   : > { %v879_v34 = vpop.f32.mrf.mxu2 }
 0x1c6   : > { %v880_v3 = vadd.f32 %v879_v34, %v767_v61  ;;  %1344 = vmatmul.f32.gmra.mxu0 %v1240_v1  ;;  %v1182_v61 = vld [vmem:[%s2120_s28 + $0xd0] sm:$0xff] }
 0x1c7   : > { %v769_v6 = vpop.f32.mrf.mxu1  ;;  %v992_v7 = vpop.f32.mrf.mxu3 }
 0x1c8   : > { %v993_v8 = vadd.f32 %v992_v7, %v880_v3  ;;  %v770_v2 = vadd.f32 %v769_v6, %v2245_v49  ;;  %v1214_v6 = vmul.f32 0.1, %v1182_v61 }
 0x1ca   : > { %v1145_v11 = vmul.f32 0.9, %v993_v8 }
 0x1cb   : > { %v1300_v28 = vpop.f32.mrf.mxu0 }
 0x1cc   : > { %v1241_v14 = vadd.f32 %v1209_v9, %v1145_v11  ;;  %1386 = vst [vmem:[%s2335_s21 + $0x28] sm:$0xff] %v1300_v28  ;;  %v1183_v28 = vld [vmem:[%s2120_s28 + $0xd8] sm:$0xff] }
 0x1cd   : > { %v882_v42 = vpop.f32.mrf.mxu2 }
 0x1ce   : > { %v883_v16 = vadd.f32 %v882_v42, %v770_v2  ;;  %1347 = vmatmul.f32.gmra.mxu0 %v1241_v14 }
 0x1cf   : > { %v772_v17 = vpop.f32.mrf.mxu1  ;;  %v995_v19 = vpop.f32.mrf.mxu3 }
 0x1d0   : > { %v996_v4 = vadd.f32 %v995_v19, %v883_v16  ;;  %v773_v24 = vadd.f32 %v772_v17, %v2254_v56  ;;  %v1215_v16 = vmul.f32 0.1, %v1183_v28 }
 0x1d2   : > { %v1146_v23 = vmul.f32 0.9, %v996_v4 }
 0x1d3   : > { %v1303_v10 = vpop.f32.mrf.mxu0 }
 0x1d4   : > { %v1242_v25 = vadd.f32 %v1210_v22, %v1146_v23  ;;  %1387 = vst [vmem:[%s2335_s21 + $0x30] sm:$0xff] %v1303_v10  ;;  %v1184_v23 = vld [vmem:[%s2120_s28 + $0xe0] sm:$0xff] }
 0x1d5   : > { %v885_v49 = vpop.f32.mrf.mxu2  ;;  %v1216_v27 = vmul.f32 0.1, %v1184_v23 }
 0x1d6   : > { %v886_v30 = vadd.f32 %v885_v49, %v773_v24  ;;  %1350 = vmatmul.f32.gmra.mxu0 %v1242_v25 }
 0x1d7   : > { %v775_v36 = vpop.f32.mrf.mxu1  ;;  %v998_v31 = vpop.f32.mrf.mxu3 }
 0x1d8   : > { %v999_v32 = vadd.f32 %v998_v31, %v886_v30  ;;  %v776_v39 = vadd.f32 %v775_v36, %v2195_v5 }
 0x1da   : > { %v1147_v35 = vmul.f32 0.9, %v999_v32 }
 0x1db   : > { %v1306_v38 = vpop.f32.mrf.mxu0 }
 0x1dc   : > { %v1243_v12 = vadd.f32 %v1211_v33, %v1147_v35  ;;  %1388 = vst [vmem:[%s2335_s21 + $0x38] sm:$0xff] %v1306_v38  ;;  %v1185_v33 = vld [vmem:[%s2120_s28 + $0xe8] sm:$0xff] }
 0x1dd   : > { %v888_v56 = vpop.f32.mrf.mxu2 }
 0x1de   : > { %v889_v40 = vadd.f32 %v888_v56, %v776_v39  ;;  %1353 = vmatmul.f32.gmra.mxu0 %v1243_v12  ;;  %v1217_v56 = vmul.f32 0.1, %v1185_v33 }
 0x1df   : > { %v778_v41 = vpop.f32.mrf.mxu1  ;;  %v1001_v45 = vpop.f32.mrf.mxu3 }
 0x1e0   : > { %v1002_v46 = vadd.f32 %v1001_v45, %v889_v40  ;;  %v779_v52 = vadd.f32 %v778_v41, %v2204_v13 }
 0x1e2   : > { %v1148_v43 = vmul.f32 0.9, %v1002_v46  ;;  %v1186_v46 = vld [vmem:[%s2120_s28 + $0xf0] sm:$0xff] }
 0x1e3   : > { %v1309_v48 = vpop.f32.mrf.mxu0 }
 0x1e4   : > { %v1244_v53 = vadd.f32 %v1212_v47, %v1148_v43  ;;  %1389 = vst [vmem:[%s2335_s21 + $0x40] sm:$0xff] %v1309_v48 }
 0x1e5   : > { %v891_v5 = vpop.f32.mrf.mxu2 }
 0x1e6   : > { %v892_v26 = vadd.f32 %v891_v5, %v779_v52  ;;  %1356 = vmatmul.f32.gmra.mxu0 %v1244_v53  ;;  %v1218_v52 = vmul.f32 0.1, %v1186_v46 }
 0x1e7   : > { %v781_v55 = vpop.f32.mrf.mxu1  ;;  %v1004_v58 = vpop.f32.mrf.mxu3 }
 0x1e8   : > { %v1005_v59 = vadd.f32 %v1004_v58, %v892_v26  ;;  %v782_v63 = vadd.f32 %v781_v55, %v2213_v21  ;;  %v1187_v58 = vld [vmem:[%s2120_s28 + $0xf8] sm:$0xff] }
 0x1ea   : > { %v1149_v60 = vmul.f32 0.9, %v1005_v59 }
 0x1eb   : > { %v1312_v62 = vpop.f32.mrf.mxu0 }
 0x1ec   : > { %v1245_v0 = vadd.f32 %v1213_v20, %v1149_v60  ;;  %1390 = vst [vmem:[%s2335_s21 + $0x48] sm:$0xff] %v1312_v62  ;;  %v1219_v62 = vmul.f32 0.1, %v1187_v58 }
 0x1ed   : > { %v894_v13 = vpop.f32.mrf.mxu2 }
 0x1ee   : > { %v895_v1 = vadd.f32 %v894_v13, %v782_v63  ;;  %1359 = vmatmul.f32.gmra.mxu0 %v1245_v0 }
 0x1ef   : > { %v784_v34 = vpop.f32.mrf.mxu1  ;;  %v1007_v50 = vpop.f32.mrf.mxu3 }
 0x1f0   : > { %v1008_v3 = vadd.f32 %v1007_v50, %v895_v1  ;;  %v785_v9 = vadd.f32 %v784_v34, %v2222_v29 }
 0x1f2   : > { %v1150_v7 = vmul.f32 0.9, %v1008_v3 }
 0x1f3   : > { %v1315_v8 = vpop.f32.mrf.mxu0 }
 0x1f4   : > { %v1246_v11 = vadd.f32 %v1214_v6, %v1150_v7  ;;  %1391 = vst [vmem:[%s2335_s21 + $0x50] sm:$0xff] %v1315_v8 }
 0x1f5   : > { %v897_v21 = vpop.f32.mrf.mxu2 }
 0x1f6   : > { %v898_v2 = vadd.f32 %v897_v21, %v785_v9  ;;  %1362 = vmatmul.f32.gmra.mxu0 %v1246_v11 }
 0x1f7   : > { %v787_v14 = vpop.f32.mrf.mxu1  ;;  %v1010_v42 = vpop.f32.mrf.mxu3 }
 0x1f8   : > { %v1011_v15 = vadd.f32 %v1010_v42, %v898_v2  ;;  %v788_v4 = vadd.f32 %v787_v14, %v2231_v37 }
 0x1fa   : > { %v1151_v17 = vmul.f32 0.9, %v1011_v15 }
 0x1fb   : > { %v1318_v19 = vpop.f32.mrf.mxu0 }
 0x1fc   : > { %v1247_v22 = vadd.f32 %v1215_v16, %v1151_v17  ;;  %1392 = vst [vmem:[%s2335_s21 + $0x58] sm:$0xff] %v1318_v19 }
 0x1fd   : > { %v900_v29 = vpop.f32.mrf.mxu2 }
 0x1fe   : > { %v901_v10 = vadd.f32 %v900_v29, %v788_v4  ;;  %1365 = vmatmul.f32.gmra.mxu0 %v1247_v22 }
 0x1ff   : > { %v790_v24 = vpop.f32.mrf.mxu1  ;;  %v1013_v25 = vpop.f32.mrf.mxu3 }
 0x200   : > { %v1014_v49 = vadd.f32 %v1013_v25, %v901_v10  ;;  %v791_v31 = vadd.f32 %v790_v24, %v2240_v44 }
 0x202   : > { %v1152_v30 = vmul.f32 0.9, %v1014_v49 }
 0x203   : > { %v1321_v36 = vpop.f32.mrf.mxu0 }
 0x204   : > { %v1248_v32 = vadd.f32 %v1216_v27, %v1152_v30  ;;  %1393 = vst [vmem:[%s2335_s21 + $0x60] sm:$0xff] %v1321_v36 }
 0x205   : > { %v903_v37 = vpop.f32.mrf.mxu2 }
 0x206   : > { %v904_v35 = vadd.f32 %v903_v37, %v791_v31  ;;  %1368 = vmatmul.f32.gmra.mxu0 %v1248_v32 }
 0x207   : > { %v793_v38 = vpop.f32.mrf.mxu1  ;;  %v1016_v39 = vpop.f32.mrf.mxu3 }
 0x208   : > { %v1017_v12 = vadd.f32 %v1016_v39, %v904_v35  ;;  %v794_v41 = vadd.f32 %v793_v38, %v2249_v51 }
 0x20a   : > { %v1153_v18 = vmul.f32 0.9, %v1017_v12 }
 0x20b   : > { %v1324_v40 = vpop.f32.mrf.mxu0 }
 0x20c   : > { %v1249_v45 = vadd.f32 %v1217_v56, %v1153_v18  ;;  %1394 = vst [vmem:[%s2335_s21 + $0x68] sm:$0xff] %v1324_v40 }
 0x20d   : > { %v906_v44 = vpop.f32.mrf.mxu2 }
 0x20e   : > { %v907_v47 = vadd.f32 %v906_v44, %v794_v41  ;;  %1371 = vmatmul.f32.gmra.mxu0 %v1249_v45 }
 0x20f   : > { %v1019_v43 = vpop.f32.mrf.mxu3  ;;  %v796_v53 = vpop.f32.mrf.mxu1 }
 0x210   : > { %v1020_v48 = vadd.f32 %v1019_v43, %v907_v47  ;;  %v797_v26 = vadd.f32 %v796_v53, %v2256_v57 }
 0x212   : > { %v1154_v5 = vmul.f32 0.9, %v1020_v48 }
 0x213   : > { %v1327_v54 = vpop.f32.mrf.mxu0 }
 0x214   : > { %v1250_v55 = vadd.f32 %v1218_v52, %v1154_v5  ;;  %1395 = vst [vmem:[%s2335_s21 + $0x70] sm:$0xff] %v1327_v54 }
 0x215   : > { %v909_v51 = vpop.f32.mrf.mxu2 }
 0x216   : > { %v910_v59 = vadd.f32 %v909_v51, %v797_v26  ;;  %1374 = vmatmul.f32.gmra.mxu0 %v1250_v55 }
 0x217   : > { %v1022_v20 = vpop.f32.mrf.mxu3 }
 0x218   : > { %v1023_v60 = vadd.f32 %v1022_v20, %v910_v59 }
 0x21a   : > { %v1155_v63 = vmul.f32 0.9, %v1023_v60 }
 0x21b   : > { %v1330_v0 = vpop.f32.mrf.mxu0 }
 0x21c   : > { %v1251_v13 = vadd.f32 %v1219_v62, %v1155_v63  ;;  %1396 = vst [vmem:[%s2335_s21 + $0x78] sm:$0xff] %v1330_v0 }
 0x21e   : > { %1377 = vmatmul.f32.gmra.mxu0 %v1251_v13 }
 0x223   : > { %v1333_v57 = vpop.f32.mrf.mxu0 }
 0x224   : > { %1397 = vst [vmem:[%s2335_s21 + $0x80] sm:$0xff] %v1333_v57 }
 0x22b   : > { %v1336_v61 = vpop.f32.mrf.mxu0 }
 0x22c   : > { %1398 = vst [vmem:[%s2335_s21 + $0x88] sm:$0xff] %v1336_v61 }
 0x233   : > { %v1339_v1 = vpop.f32.mrf.mxu0 }
 0x234   : > { %1399 = vst [vmem:[%s2335_s21 + $0x90] sm:$0xff] %v1339_v1 }
 0x23b   : > { %v1342_v34 = vpop.f32.mrf.mxu0 }
 0x23c   : > { %1400 = vst [vmem:[%s2335_s21 + $0x98] sm:$0xff] %v1342_v34 }
 0x243   : > { %v1345_v50 = vpop.f32.mrf.mxu0 }
 0x244   : > { %1401 = vst [vmem:[%s2335_s21 + $0xa0] sm:$0xff] %v1345_v50 }
 0x24b   : > { %v1348_v3 = vpop.f32.mrf.mxu0 }
 0x24c   : > { %1402 = vst [vmem:[%s2335_s21 + $0xa8] sm:$0xff] %v1348_v3 }
 0x253   : > { %v1351_v6 = vpop.f32.mrf.mxu0 }
 0x254   : > { %1403 = vst [vmem:[%s2335_s21 + $0xb0] sm:$0xff] %v1351_v6 }
 0x25b   : > { %v1354_v7 = vpop.f32.mrf.mxu0 }
 0x25c   : > { %1404 = vst [vmem:[%s2335_s21 + $0xb8] sm:$0xff] %v1354_v7 }
 0x263   : > { %v1357_v8 = vpop.f32.mrf.mxu0 }
 0x264   : > { %1405 = vst [vmem:[%s2335_s21 + $0xc0] sm:$0xff] %v1357_v8 }
 0x26b   : > { %v1360_v9 = vpop.f32.mrf.mxu0 }
 0x26c   : > { %1406 = vst [vmem:[%s2335_s21 + $0xc8] sm:$0xff] %v1360_v9 }
 0x273   : > { %v1363_v11 = vpop.f32.mrf.mxu0 }
 0x274   : > { %1407 = vst [vmem:[%s2335_s21 + $0xd0] sm:$0xff] %v1363_v11 }
 0x27b   : > { %v1366_v21 = vpop.f32.mrf.mxu0 }
 0x27c   : > { %1408 = vst [vmem:[%s2335_s21 + $0xd8] sm:$0xff] %v1366_v21 }
 0x283   : > { %v1369_v28 = vpop.f32.mrf.mxu0 }
 0x284   : > { %1409 = vst [vmem:[%s2335_s21 + $0xe0] sm:$0xff] %v1369_v28 }
 0x28b   : > { %v1372_v2 = vpop.f32.mrf.mxu0 }
 0x28c   : > { %1410 = vst [vmem:[%s2335_s21 + $0xe8] sm:$0xff] %v1372_v2 }
 0x293   : > { %v1375_v14 = vpop.f32.mrf.mxu0 }
 0x294   : > { %1411 = vst [vmem:[%s2335_s21 + $0xf0] sm:$0xff] %v1375_v14 }
 0x29b   : > { %v1378_v42 = vpop.f32.mrf.mxu0 }
 0x29c   : > { %1412 = vst [vmem:[%s2335_s21 + $0xf8] sm:$0xff] %v1378_v42 }
 0x29d   : > { %1871 = shalt.err (!%p1868_p0)
}
 0x29e   : > { %s1946_s13 = smov 128   ;;  %s1947_s14 = smov 8  }
 0x29f   : > { %1642 = dma.vmem_to_hbm [thread:$0]  (%p2057_p5), %s1427_s12, 4096, %s1429_s9, %s1414_s27, %s1946_s13, %s1946_s13, %s1947_s14  }
 0x2a0 PF: > { %s2471_s1 = sld [smem:[#allocation16_spill]]  ;;  %p1659_p3 = pnand %p1559_p11, %p2018_p6 }
 0x2a1   : > { %s2473_s20 = sld [smem:[#allocation18_spill]] }
 0x2a2   : > { %p1660_p7 = pneg %p1659_p3 }
 0x2a6   : > { %s1443_s24 = sand.u32 1, %s2471_s1  }
 0x2a7   : > { %s1444_s0 = scalar_lea.sflag [#allocation5], %s1443_s24 }
 0x2a8   : > { %1913 = dma.done.wait (%p1660_p7), %s1444_s0, 4096  }
 0x2a9   : > { %1915 = vsyncadd (%p1660_p7), %s1444_s0, 4294963200  ;;  %s21_s20 = sadd.s32 1, %s2473_s20   ;;  %s2474_s5 = sld [smem:[#allocation17_spill]] }
 0x2aa   : > { %p18_p9 = scmp.ge.s32.totalorder %s21_s20, 4   ;;  %s2475_s17 = sld [smem:[#allocation21_spill]] }
 0x2ab   : > { %s2476_s11 = sld [smem:[#allocation20_spill]]  ;;  %s2477_s15 = smov %s1922_s16 }
 0x2ac   : > { %s2479_s18 = smov %s1934_s19 }
 0x2ad   :  { %20 = sbr.rel (!%p18_p9) target bundleno = 10 (0xa), region = 109 }
 0x2af   : > { %s2478_s16 = smov %s2474_s5 }
 0x2b1   : > { %s2480_s19 = smov %s2476_s11 }
 0x2b2   :  { %1450 = vsyncpa [#allocation4], 1 }
 0x2b3   :  { %1452 = vsyncpa [#allocation4 + $0x1], 1 }
 0x2b4   :  { %1453 = vsyncpa [#allocation7], 1 }
 0x2b5   :  { %1454 = vsyncpa [#allocation5], 1 }
 0x2b6   :  { %1456 = vsyncpa [#allocation5 + $0x1], 1 }

</bundles_post_ra>
